<compile_context>
chip_gen: v5e
topology: v5e:2x2
jax: 0.10.0
libtpu: 0.0.40
codegen_flags: <defaults>
</compile_context>

<pallas_src>
import jax
import jax.numpy as jnp
from jax.experimental import pallas as pl
from jax.experimental.pallas import tpu as pltpu


# ---------------------------------------------------------------------------
# Pallas kernel: per-point MLP + running global max-pool over point tiles
# ---------------------------------------------------------------------------
def _feat_kernel(x_ref, w1_ref, t1_ref, w2_ref, t2_ref, w3_ref, t3_ref,
                 o_ref, acc_ref):
    nt = pl.program_id(2)

    @pl.when(nt == 0)
    def _():
        acc_ref[...] = jnp.full_like(acc_ref, -jnp.inf)

    x = x_ref[...]                                            # (tn, 3) f32

    # conv1 (k=1) + bn1 + relu -> (tn, 64); K=3 is tiny, keep f32.
    h = jnp.dot(x, w1_ref[...], preferred_element_type=jnp.float32)
    h = jnp.maximum(h + t1_ref[...], 0.0)

    # conv2 (k=1) + bn2 + relu -> (tn, 128); bf16 MXU, f32 accumulation.
    h = jnp.dot(h.astype(jnp.bfloat16), w2_ref[...],
                preferred_element_type=jnp.float32)
    h = jnp.maximum(h + t2_ref[...], 0.0)

    # conv3 (k=1): RAW output only.  bias + ReLU are applied once on the
    # pooled accumulator in the final pl.when (they commute with the max).
    z = jnp.dot(h.astype(jnp.bfloat16), w3_ref[...],
                preferred_element_type=jnp.float32)           # (tn, co)

    # Running global max-pool over the point axis.  Padded rows are edge
    # replicas of a real point, so no mask is needed.
    acc_ref[...] = jnp.maximum(acc_ref[...],
                               jnp.max(z, axis=0, keepdims=True))

    @pl.when(nt == pl.num_programs(2) - 1)
    def _():
        o_ref[...] = jnp.maximum(acc_ref[...] + t3_ref[...], 0.0)


# ---------------------------------------------------------------------------
# Parameter preparation (all folding happens once, outside the kernel)
# ---------------------------------------------------------------------------
def _fold_bn(bias, gamma, beta, mean, var, eps=1e-5):
    scale = gamma * jax.lax.rsqrt(var + eps)
    shift = (bias - mean) * scale + beta
    return scale, shift


def prepare_params(p):
    """Fold eval-mode BN into weights (scale) / per-channel shifts, cast the
    heavy conv weights to bf16, fold the 3x3 identity into the fc3 bias."""
    s1, t1 = _fold_bn(p["b1"], p["g1"], p["be1"], p["m1"], p["v1"])
    s2, t2 = _fold_bn(p["b2"], p["g2"], p["be2"], p["m2"], p["v2"])
    s3, t3 = _fold_bn(p["b3"], p["g3"], p["be3"], p["m3"], p["v3"])
    s4, t4 = _fold_bn(p["fb1"], p["g4"], p["be4"], p["m4"], p["v4"])
    s5, t5 = _fold_bn(p["fb2"], p["g5"], p["be5"], p["m5"], p["v5"])
    iden = jnp.array([1, 0, 0, 0, 1, 0, 0, 0, 1], jnp.float32)
    return {
        "w1": (p["w1"] * s1[None, :]).astype(jnp.float32),     # (3, 64)
        "t1": t1[None, :].astype(jnp.float32),                 # (1, 64)
        "w2": (p["w2"] * s2[None, :]).astype(jnp.bfloat16),    # (64, 128)
        "t2": t2[None, :].astype(jnp.float32),                 # (1, 128)
        "w3": (p["w3"] * s3[None, :]).astype(jnp.bfloat16),    # (128, 1024)
        "t3": t3[None, :].astype(jnp.float32),                 # (1, 1024)
        "f1": (p["f1"] * s4[None, :]).astype(jnp.float32),     # (1024, 512)
        "t4": t4[None, :].astype(jnp.float32),
        "f2": (p["f2"] * s5[None, :]).astype(jnp.float32),     # (512, 256)
        "t5": t5[None, :].astype(jnp.float32),
        "f3": p["f3"].astype(jnp.float32),                     # (256, 9)
        "b3": (p["fb3"] + iden)[None, :].astype(jnp.float32),  # (1, 9)
    }


def make_params(key):
    ks = jax.random.split(key, 12)
    f32 = jnp.float32
    p = {}
    # conv weights stored as (Cin, Cout) for x @ W
    p["w1"] = jax.random.normal(ks[0], (3, 64), f32) * 0.1
    p["b1"] = jax.random.normal(ks[1], (64,), f32) * 0.1
    p["w2"] = jax.random.normal(ks[2], (64, 128), f32) * 0.05
    p["b2"] = jax.random.normal(ks[3], (128,), f32) * 0.1
    p["w3"] = jax.random.normal(ks[4], (128, 1024), f32) * 0.05
    p["b3"] = jax.random.normal(ks[5], (1024,), f32) * 0.1
    p["f1"] = jax.random.normal(ks[6], (1024, 512), f32) * 0.02
    p["fb1"] = jax.random.normal(ks[7], (512,), f32) * 0.1
    p["f2"] = jax.random.normal(ks[8], (512, 256), f32) * 0.02
    p["fb2"] = jax.random.normal(ks[9], (256,), f32) * 0.1
    p["f3"] = jax.random.normal(ks[10], (256, 9), f32) * 0.02
    p["fb3"] = jax.random.normal(ks[11], (9,), f32) * 0.1
    # deterministic, non-trivial BatchNorm params for bn1..bn5
    for i, c in zip(range(1, 6), (64, 128, 1024, 512, 256)):
        idx = jnp.arange(c, dtype=f32)
        p[f"g{i}"] = 1.0 + 0.01 * jnp.cos(idx)        # gamma
        p[f"be{i}"] = 0.01 * jnp.sin(idx)             # beta
        p[f"m{i}"] = 0.005 * jnp.sin(0.5 * idx)       # running_mean
        p[f"v{i}"] = 1.0 + 0.02 * jnp.cos(0.3 * idx)  # running_var
    return p


# ---------------------------------------------------------------------------
# Forward pass
# ---------------------------------------------------------------------------
def _round_up(a, b):
    return (a + b - 1) // b * b


def stn3d_forward(x_bcn, params, *, tn=1024, c_split=None):
    """x_bcn: (B, 3, N) float32, PyTorch Conv1d NCL layout.  Returns (B, 3, 3).

    tn:      point-tile size (default 1024; v5e may prefer 512).
    c_split: split of conv3's 1024 output channels into a second "parallel"
             grid axis (megacore on v7x for small B).  None = auto
             (2 when B == 1, else 1)."""
    B, C, N = x_bcn.shape
    assert C == 3 and N >= 1
    q = prepare_params(params)

    if c_split is None:
        c_split = 2 if B == 1 else 1
    assert 1024 % c_split == 0
    co = 1024 // c_split
    assert co % 128 == 0

    x = jnp.transpose(x_bcn, (0, 2, 1)).astype(jnp.float32)     # (B, N, 3)
    tn = max(8, min(tn, _round_up(N, 8)))
    n_pad = _round_up(N, tn)
    if n_pad != N:
        # Edge-replication padding: padded rows duplicate the last real point,
        # so they can never win the max -> no in-kernel mask needed.
        x = jnp.pad(x, ((0, 0), (0, n_pad - N), (0, 0)), mode="edge")
    n_tiles = n_pad // tn

    def const2d(a):
        return pl.BlockSpec(a.shape, lambda b, c, n: (0, 0))

    flops = 2 * B * n_pad * ((3 * 64 + 64 * 128) * c_split + 128 * 1024)
    bytes_accessed = (int(x.size) * 4 * c_split + B * 1024 * 4
                      + sum(int(a.size) * a.dtype.itemsize
                            for a in (q["w1"], q["t1"], q["w2"], q["t2"],
                                      q["w3"], q["t3"])))

    pooled = pl.pallas_call(
        _feat_kernel,
        out_shape=jax.ShapeDtypeStruct((B, 1, 1024), jnp.float32),
        grid_spec=pltpu.PrefetchScalarGridSpec(
            num_scalar_prefetch=0,
            # (batch, channel-split, point-tiles); reduction axis last.
            grid=(B, c_split, n_tiles),
            in_specs=[pl.BlockSpec((None, tn, 3), lambda b, c, n: (b, n, 0)),
                      const2d(q["w1"]), const2d(q["t1"]),
                      const2d(q["w2"]), const2d(q["t2"]),
                      pl.BlockSpec((128, co), lambda b, c, n: (0, c)),
                      pl.BlockSpec((1, co), lambda b, c, n: (0, c))],
            out_specs=pl.BlockSpec((None, 1, co), lambda b, c, n: (b, 0, c)),
            scratch_shapes=[pltpu.VMEM((1, co), jnp.float32)],
        ),
        compiler_params=pltpu.CompilerParams(
            dimension_semantics=("parallel", "parallel", "arbitrary"),
            vmem_limit_bytes=48 * 1024 * 1024),
        cost_estimate=pl.CostEstimate(flops=flops, transcendentals=0,
                                      bytes_accessed=bytes_accessed),
    )(x, q["w1"], q["t1"], q["w2"], q["t2"], q["w3"], q["t3"])

    pooled = pooled.reshape(B, 1024)                             # lane-dense

    # FC head: one batched (M = B) matmul chain in plain XLA.
    g = jax.nn.relu(pooled @ q["f1"] + q["t4"])
    g = jax.nn.relu(g @ q["f2"] + q["t5"])
    out = g @ q["f3"] + q["b3"]                                  # identity folded into b3
    return out.reshape(B, 3, 3)


# ---------------------------------------------------------------------------
# References for verification
# ---------------------------------------------------------------------------
def stn3d_reference(x_bcn, params):
    """Matched-precision plain-JAX reference (same folds + bf16 casts).
    Note: applying bias+ReLU before the max here is mathematically identical
    to the kernel's hoisted ReLU(max + t3) (monotone ops commute with max)."""
    q = prepare_params(params)
    x = jnp.transpose(x_bcn, (0, 2, 1)).astype(jnp.float32)
    h = jax.nn.relu(x @ q["w1"] + q["t1"])
    h = jax.nn.relu(jnp.matmul(h.astype(jnp.bfloat16), q["w2"],
                               preferred_element_type=jnp.float32) + q["t2"])
    h = jax.nn.relu(jnp.matmul(h.astype(jnp.bfloat16), q["w3"],
                               preferred_element_type=jnp.float32) + q["t3"])
    g = jnp.max(h, axis=1)
    g = jax.nn.relu(g @ q["f1"] + q["t4"])
    g = jax.nn.relu(g @ q["f2"] + q["t5"])
    out = g @ q["f3"] + q["b3"]
    return out.reshape(-1, 3, 3)


def stn3d_reference_f32(x_bcn, p):
    """Full-f32 eval-mode reference (original module semantics)."""
    def ss(bias, gamma, beta, mean, var, eps=1e-5):
        s = gamma / jnp.sqrt(var + eps)
        return s[None, :], ((bias - mean) * s + beta)[None, :]
    s1, t1 = ss(p["b1"], p["g1"], p["be1"], p["m1"], p["v1"])
    s2, t2 = ss(p["b2"], p["g2"], p["be2"], p["m2"], p["v2"])
    s3, t3 = ss(p["b3"], p["g3"], p["be3"], p["m3"], p["v3"])
    s4, t4 = ss(p["fb1"], p["g4"], p["be4"], p["m4"], p["v4"])
    s5, t5 = ss(p["fb2"], p["g5"], p["be5"], p["m5"], p["v5"])
    x = jnp.transpose(x_bcn, (0, 2, 1)).astype(jnp.float32)
    h = jax.nn.relu(x @ p["w1"] * s1 + t1)
    h = jax.nn.relu(h @ p["w2"] * s2 + t2)
    h = jax.nn.relu(h @ p["w3"] * s3 + t3)
    g = jnp.max(h, axis=1)
    g = jax.nn.relu(g @ p["f1"] * s4 + t4)
    g = jax.nn.relu(g @ p["f2"] * s5 + t5)
    g = g @ p["f3"] + p["fb3"][None, :]
    iden = jnp.array([1, 0, 0, 0, 1, 0, 0, 0, 1], jnp.float32)[None, :]
    return (g + iden).reshape(-1, 3, 3)


if __name__ == "__main__":
    key = jax.random.PRNGKey(0)
    kx, kp = jax.random.split(key)

    # Small shapes. N=200 is deliberately not a multiple of the 128-point tile,
    # so the run exercises the multi-tile running max AND the edge padding.
    B, N = 2, 200
    x = jax.random.normal(kx, (B, 3, N), jnp.float32)   # PyTorch NCL layout
    params = make_params(kp)

    ref = stn3d_reference(x, params)        # matched-precision reference
    ref32 = stn3d_reference_f32(x, params)  # full-f32 eval-mode module

    # Default path: c_split auto -> 1 (B >= 2), two point tiles.
    fwd = jax.jit(lambda xx, pp: stn3d_forward(xx, pp, tn=128))
    out = jax.block_until_ready(fwd(x, params))
    assert out.shape == (B, 3, 3)
    assert jnp.allclose(out, ref, atol=2e-3, rtol=2e-3), "mismatch vs matched ref"
    assert jnp.allclose(out, ref32, atol=5e-2, rtol=5e-2), "mismatch vs f32 ref"

    # Channel-split path (v7x megacore for small B): split conv3's 1024 output
    # channels across a second "parallel" grid axis and verify it agrees.
    fwd_cs = jax.jit(lambda xx, pp: stn3d_forward(xx, pp, tn=128, c_split=2))
    out_cs = jax.block_until_ready(fwd_cs(x, params))
    assert jnp.allclose(out_cs, ref, atol=2e-3, rtol=2e-3), "mismatch (c_split=2)"
    assert jnp.allclose(out_cs, out, atol=1e-3, rtol=1e-3), "c_split inconsistency"

    print("KERNEL_OK")
</pallas_src>

<mosaic_0001>
module attributes {stable_mosaic.version = 11 : i64} {
  func.func @_feat_kernel(%arg0: i32, %arg1: i32, %arg2: i32, %arg3: memref<1x128x3xf32, #tpu.memory_space<vmem>>, %arg4: memref<3x64xf32, #tpu.memory_space<vmem>>, %arg5: memref<1x64xf32, #tpu.memory_space<vmem>>, %arg6: memref<64x128xbf16, #tpu.memory_space<vmem>>, %arg7: memref<1x128xf32, #tpu.memory_space<vmem>>, %arg8: memref<128x1024xbf16, #tpu.memory_space<vmem>>, %arg9: memref<1x1024xf32, #tpu.memory_space<vmem>>, %arg10: memref<1x1x1024xf32, #tpu.memory_space<vmem>>, %arg11: memref<1x1024xf32, #tpu.memory_space<vmem>>) attributes {dimension_semantics = [#tpu.dimension_semantics<parallel>, #tpu.dimension_semantics<parallel>, #tpu.dimension_semantics<arbitrary>], iteration_bounds = array<i64: 2, 1, 2>, scalar_prefetch = 0 : i64, scratch_operands = 1 : i64, tpu.core_type = #tpu.core_type<tc>, window_params = [{transform_indices = @transform_0, window_bounds = array<i64: 1, 128, 3>}, {pipeline_mode = #tpu.pipeline_mode<synchronous>, transform_indices = @transform_1, window_bounds = array<i64: 3, 64>}, {pipeline_mode = #tpu.pipeline_mode<synchronous>, transform_indices = @transform_2, window_bounds = array<i64: 1, 64>}, {pipeline_mode = #tpu.pipeline_mode<synchronous>, transform_indices = @transform_3, window_bounds = array<i64: 64, 128>}, {pipeline_mode = #tpu.pipeline_mode<synchronous>, transform_indices = @transform_4, window_bounds = array<i64: 1, 128>}, {transform_indices = @transform_5, window_bounds = array<i64: 128, 1024>}, {transform_indices = @transform_6, window_bounds = array<i64: 1, 1024>}, {transform_indices = @transform_7, window_bounds = array<i64: 1, 1, 1024>}]} {
    %c0_i32 = arith.constant 0 : i32
    %0 = arith.cmpi eq, %arg2, %c0_i32 : i32
    %1 = arith.extui %0 : i1 to i32
    %c0_i32_0 = arith.constant 0 : i32
    %2 = arith.cmpi ne, %1, %c0_i32_0 : i32
    scf.if %2 {
      %cst_23 = arith.constant 0xFF800000 : f32
      %31 = vector.broadcast %cst_23 : f32 to vector<1x1024xf32>
      %c0_24 = arith.constant 0 : index
      %c0_25 = arith.constant 0 : index
      %32 = vector.load %arg11[%c0_24, %c0_25] : memref<1x1024xf32, #tpu.memory_space<vmem>>, vector<1x1024xf32>
      tpu.vector_store %arg11[%c0_24, %c0_25], %31 {strides = array<i32>} : memref<1x1024xf32, #tpu.memory_space<vmem>>, vector<1x1024xf32>,
    } else {
    }
    %c0 = arith.constant 0 : index
    %c0_1 = arith.constant 0 : index
    %c0_2 = arith.constant 0 : index
    %3 = vector.load %arg3[%c0, %c0_1, %c0_2] : memref<1x128x3xf32, #tpu.memory_space<vmem>>, vector<1x128x3xf32>
    %4 = vector.shape_cast %3 : vector<1x128x3xf32> to vector<128x3xf32>
    %c0_3 = arith.constant 0 : index
    %c0_4 = arith.constant 0 : index
    %5 = vector.load %arg4[%c0_3, %c0_4] : memref<3x64xf32, #tpu.memory_space<vmem>>, vector<3x64xf32>
    %cst = arith.constant dense<0.000000e+00> : vector<128x64xf32>
    %6 = tpu.matmul %4, %5, %cst {dimension_numbers = #tpu.dot_dimension_numbers<[1], [0], [0], [1], [0, 0, 1, 1], [], []>} : vector<128x3xf32>, vector<3x64xf32>, vector<128x64xf32> -> vector<128x64xf32>
    %c0_5 = arith.constant 0 : index
    %c0_6 = arith.constant 0 : index
    %7 = vector.load %arg5[%c0_5, %c0_6] : memref<1x64xf32, #tpu.memory_space<vmem>>, vector<1x64xf32>
    %8 = vector.broadcast %7 : vector<1x64xf32> to vector<128x64xf32>
    %9 = arith.addf %6, %8 : vector<128x64xf32>
    %cst_7 = arith.constant 0.000000e+00 : f32
    %10 = vector.broadcast %cst_7 : f32 to vector<128x64xf32>
    %11 = arith.maximumf %9, %10 : vector<128x64xf32>
    %12 = arith.truncf %11 : vector<128x64xf32> to vector<128x64xbf16>
    %c0_8 = arith.constant 0 : index
    %c0_9 = arith.constant 0 : index
    %13 = vector.load %arg6[%c0_8, %c0_9] : memref<64x128xbf16, #tpu.memory_space<vmem>>, vector<64x128xbf16>
    %cst_10 = arith.constant dense<0.000000e+00> : vector<128x128xf32>
    %14 = tpu.matmul %12, %13, %cst_10 {dimension_numbers = #tpu.dot_dimension_numbers<[1], [0], [0], [1], [0, 0, 1, 1], [], []>} : vector<128x64xbf16>, vector<64x128xbf16>, vector<128x128xf32> -> vector<128x128xf32>
    %c0_11 = arith.constant 0 : index
    %c0_12 = arith.constant 0 : index
    %15 = vector.load %arg7[%c0_11, %c0_12] : memref<1x128xf32, #tpu.memory_space<vmem>>, vector<1x128xf32>
    %16 = vector.broadcast %15 : vector<1x128xf32> to vector<128x128xf32>
    %17 = arith.addf %14, %16 : vector<128x128xf32>
    %cst_13 = arith.constant 0.000000e+00 : f32
    %18 = vector.broadcast %cst_13 : f32 to vector<128x128xf32>
    %19 = arith.maximumf %17, %18 : vector<128x128xf32>
    %20 = arith.truncf %19 : vector<128x128xf32> to vector<128x128xbf16>
    %c0_14 = arith.constant 0 : index
    %c0_15 = arith.constant 0 : index
    %21 = vector.load %arg8[%c0_14, %c0_15] : memref<128x1024xbf16, #tpu.memory_space<vmem>>, vector<128x1024xbf16>
    %cst_16 = arith.constant dense<0.000000e+00> : vector<128x1024xf32>
    %22 = tpu.matmul %20, %21, %cst_16 {dimension_numbers = #tpu.dot_dimension_numbers<[1], [0], [0], [1], [0, 0, 1, 1], [], []>} : vector<128x128xbf16>, vector<128x1024xbf16>, vector<128x1024xf32> -> vector<128x1024xf32>
    %c0_17 = arith.constant 0 : index
    %c0_18 = arith.constant 0 : index
    %23 = vector.load %arg11[%c0_17, %c0_18] : memref<1x1024xf32, #tpu.memory_space<vmem>>, vector<1x1024xf32>
    %cst_19 = arith.constant dense<0xFF800000> : vector<1024xf32>
    %24 = vector.multi_reduction <maximumf>, %22, %cst_19 [0] : vector<128x1024xf32> to vector<1024xf32>
    %25 = vector.shape_cast %24 : vector<1024xf32> to vector<1x1024xf32>
    %26 = arith.maximumf %23, %25 : vector<1x1024xf32>
    %c0_20 = arith.constant 0 : index
    %c0_21 = arith.constant 0 : index
    %27 = vector.load %arg11[%c0_20, %c0_21] : memref<1x1024xf32, #tpu.memory_space<vmem>>, vector<1x1024xf32>
    tpu.vector_store %arg11[%c0_20, %c0_21], %26 {strides = array<i32>} : memref<1x1024xf32, #tpu.memory_space<vmem>>, vector<1x1024xf32>,
    %c1_i32 = arith.constant 1 : i32
    %28 = arith.cmpi eq, %arg2, %c1_i32 : i32
    %29 = arith.extui %28 : i1 to i32
    %c0_i32_22 = arith.constant 0 : i32
    %30 = arith.cmpi ne, %29, %c0_i32_22 : i32
    scf.if %30 {
      %c0_23 = arith.constant 0 : index
      %c0_24 = arith.constant 0 : index
      %31 = vector.load %arg11[%c0_23, %c0_24] : memref<1x1024xf32, #tpu.memory_space<vmem>>, vector<1x1024xf32>
      %c0_25 = arith.constant 0 : index
      %c0_26 = arith.constant 0 : index
      %32 = vector.load %arg9[%c0_25, %c0_26] : memref<1x1024xf32, #tpu.memory_space<vmem>>, vector<1x1024xf32>
      %33 = arith.addf %31, %32 : vector<1x1024xf32>
      %cst_27 = arith.constant 0.000000e+00 : f32
      %34 = vector.broadcast %cst_27 : f32 to vector<1x1024xf32>
      %35 = arith.maximumf %33, %34 : vector<1x1024xf32>
      %c0_28 = arith.constant 0 : index
      %c0_29 = arith.constant 0 : index
      %c0_30 = arith.constant 0 : index
      %36 = vector.load %arg10[%c0_28, %c0_29, %c0_30] : memref<1x1x1024xf32, #tpu.memory_space<vmem>>, vector<1x1x1024xf32>
      %37 = vector.shape_cast %36 : vector<1x1x1024xf32> to vector<1x1024xf32>
      %38 = vector.shape_cast %35 : vector<1x1024xf32> to vector<1x1x1024xf32>
      tpu.vector_store %arg10[%c0_28, %c0_29, %c0_30], %38 {strides = array<i32>} : memref<1x1x1024xf32, #tpu.memory_space<vmem>>, vector<1x1x1024xf32>,
    } else {
    }
    return
  }
  func.func @transform_0(%arg0: i32, %arg1: i32, %arg2: i32) -> (i32, i32, i32) {
    %c0_i32 = arith.constant 0 : i32
    %c0_i32_0 = arith.constant 0 : i32
    return %arg0, %arg2, %c0_i32 : i32, i32, i32
  }
  func.func @transform_1(%arg0: i32, %arg1: i32, %arg2: i32) -> (i32, i32) {
    %c0_i32 = arith.constant 0 : i32
    %c0_i32_0 = arith.constant 0 : i32
    %c0_i32_1 = arith.constant 0 : i32
    return %c0_i32, %c0_i32_0 : i32, i32
  }
  func.func @transform_2(%arg0: i32, %arg1: i32, %arg2: i32) -> (i32, i32) {
    %c0_i32 = arith.constant 0 : i32
    %c0_i32_0 = arith.constant 0 : i32
    %c0_i32_1 = arith.constant 0 : i32
    return %c0_i32, %c0_i32_0 : i32, i32
  }
  func.func @transform_3(%arg0: i32, %arg1: i32, %arg2: i32) -> (i32, i32) {
    %c0_i32 = arith.constant 0 : i32
    %c0_i32_0 = arith.constant 0 : i32
    %c0_i32_1 = arith.constant 0 : i32
    return %c0_i32, %c0_i32_0 : i32, i32
  }
  func.func @transform_4(%arg0: i32, %arg1: i32, %arg2: i32) -> (i32, i32) {
    %c0_i32 = arith.constant 0 : i32
    %c0_i32_0 = arith.constant 0 : i32
    %c0_i32_1 = arith.constant 0 : i32
    return %c0_i32, %c0_i32_0 : i32, i32
  }
  func.func @transform_5(%arg0: i32, %arg1: i32, %arg2: i32) -> (i32, i32) {
    %c0_i32 = arith.constant 0 : i32
    %c0_i32_0 = arith.constant 0 : i32
    return %c0_i32, %arg1 : i32, i32
  }
  func.func @transform_6(%arg0: i32, %arg1: i32, %arg2: i32) -> (i32, i32) {
    %c0_i32 = arith.constant 0 : i32
    %c0_i32_0 = arith.constant 0 : i32
    return %c0_i32, %arg1 : i32, i32
  }
  func.func @transform_7(%arg0: i32, %arg1: i32, %arg2: i32) -> (i32, i32, i32) {
    %c0_i32 = arith.constant 0 : i32
    %c0_i32_0 = arith.constant 0 : i32
    return %arg0, %c0_i32, %arg1 : i32, i32, i32
  }
}

</mosaic_0001>

<bundles_post_ra>
// kernel: _lambda_.1
= control target key start
LH: loop header
LB: loop body
LE: loop exit
PB: predicated region body
PF: predicated region fallthrough
CT: control target
= control target key end

     0   :  { %s2276_s24 = smov 0   ;;  %s2278_s25 = smov 0   ;;  %s2907_s0 = inlined_call_operand.vmem [shape: f32[2,256,3], index: 0, kind: input, shape index: {}]   ;;  %s2908_s1 = inlined_call_operand.vmem [shape: f32[3,64], index: 1, kind: input, shape index: {}]   ;;  %s2909_s2 = inlined_call_operand.vmem [shape: f32[1,64], index: 2, kind: input, shape index: {}]   ;;  %s2910_s3 = inlined_call_operand.vmem [shape: bf16[64,128], index: 3, kind: input, shape index: {}]   ;;  %s2911_s4 = inlined_call_operand.vmem [shape: f32[1,128], index: 4, kind: input, shape index: {}]   ;;  %s2912_s5 = inlined_call_operand.vmem [shape: bf16[128,1024], index: 5, kind: input, shape index: {}]   ;;  %s2913_s6 = inlined_call_operand.vmem [shape: f32[1,1024], index: 6, kind: input, shape index: {}]   ;;  %s2914_s7 = inlined_call_operand.vmem [shape: f32[2,1,1024], index: 7, kind: output, shape index: {}]  }
   0x1   :  { %s2280_s26 = smov 0   ;;  %s2282_s27 = smov 0  }
   0x2   :  { %s2284_s28 = smov 0  }
   0x3 LB: > { %s29_s29 = sadd.s32 1, %s2225_s26  ;;  %s36_s30 = sadd.s32 1, %s2229_s27  ;;  %s2233_s28 = sphi %s2284_s28, %s17_s28   ;;  %s2229_s27 = sphi %s2282_s27, %s2918_s27   ;;  %s2225_s26 = sphi %s2280_s26, %s2917_s26   ;;  %s2221_s25 = sphi %s2278_s25, %s2916_s25   ;;  %s2217_s24 = sphi %s2276_s24, %s2915_s24  }
   0x4   : > { %p30_p0 = scmp.ge.s32.totalorder %s29_s29, 2  ;;  %p1773_p1 = scmp.ge.s32.totalorder %s2233_s28, 1 }
   0x5   : > { %p286_p2 = scmp.lt.s32.totalorder %s2233_s28, 5 }
   0x6   : > { %s2920_s29 = smov (%p30_p0, %s29_s29), 0  ;;  %s2922_s30 = smov (!%p30_p0, %s36_s30), %s2229_s27 }
   0x7   : > { %p287_p3 = pnand %p1773_p1, %p286_p2  ;;  %p38_p4 = scmp.ge.s32.totalorder %s2922_s30, 2 }
   0x8   : > { %s1774_s8 = sshll.u32 (!%p287_p3), %s2217_s24, 4  ;;  %p335_p5 = scmp.lt.s32.totalorder (!%p287_p3), %s2221_s25, 1 }
   0x9   : > { %s2924_s30 = smov (%p38_p4, %s2922_s30), 0  ;;  %290 = sbr.rel (%p287_p3) target bundleno = 720 (0x2d0), region = 48 }
   0xa   : > { %p337_p6 = scmp.lt.s32.totalorder (!%p287_p3), %s1774_s8, 31  ;;  %p1778_p7 = scmp.ne.s32.totalorder (!%p287_p3), %s2217_s24, 0 }
   0xe   : > { %s2926_s25 = smov (!%p335_p5, %s2221_s25), 1  ;;  %s2928_s8 = smov (!%p337_p6, %s1774_s8), 31 }
   0xf   : > { %s1775_s9 = sshll.u32 %s2926_s25, 5  ;;  %s1777_s10 = sshll.u32 %s2926_s25, 3 }
  0x10   : > { %s340_s11 = sadd.s32 %s1775_s9, %s2928_s8  ;;  %s2312_s14 = scalar_lea.vmem %s2914_s7, %s1777_s10 }
  0x11   : > { %s1776_s15 = sshll.u32 %s340_s11, 3  ;;  %368 = sbr.rel (%p1778_p7) target bundleno = 24 (0x18), region = 52 }
  0x12   : > { %s2317_s18 = scalar_lea.vmem %s2907_s0, %s1776_s15 }
  0x16   : > { %v2235_v0 = vmov -inf  }
  0x17   : > { %369 = vst [vmem:[#allocation2] sm:$0xff] %v2235_v0 }
  0x18 PF: > { %v386_v1 = vld [vmem:[%s2908_s1] sm:$0x7]  ;;  %vm440_vm0 = vcmask 1042432   ;;  %vm391_vm1 = vcmask 23552   ;;  %v371_v3 = vld [vmem:[%s2317_s18 + $0x8] sm:$0xff]  ;;  %v372_v4 = vld [vmem:[%s2317_s18 + $0x10] sm:$0xff] }
  0x19   : > { %v370_v2 = vld [vmem:[%s2317_s18] sm:$0xff]  ;;  %1779 = vmatpush.msk.msra.mxu0 %vm440_vm0, %v386_v1  ;;  %2147 = vmatpush.msk.msra.mxu3 %vm440_vm0, %v386_v1  ;;  %v379_v5 = vld [vmem:[%s2317_s18 + $0x48] sm:$0xff]  ;;  %v373_v6 = vld [vmem:[%s2317_s18 + $0x18] sm:$0xff]  ;;  %vm569_vm2 = vcmask 523264   ;;  %vm1629_vm3 = vcmask 1042434   ;;  %vm1627_vm4 = vcmask 1040384  }
  0x1a   : > { %1780 = vmatmul.msk.f32.vlgmr.msra.gmra.mxu0 %vm391_vm1, %v370_v2  ;;  %1789 = vmatmul.msk.f32.vlgmr.msra.gmra.mxu3 %vm391_vm1, %v379_v5  ;;  %v380_v7 = vld [vmem:[%s2317_s18 + $0x50] sm:$0xff]  ;;  %v374_v8 = vld [vmem:[%s2317_s18 + $0x20] sm:$0xff]  ;;  %v381_v9 = vld [vmem:[%s2317_s18 + $0x58] sm:$0xff]  ;;  %vm1631_vm5 = vcmask 1041408   ;;  %vm1635_vm6 = vcmask 1046534   ;;  %vm1633_vm7 = vcmask 1044484  }
  0x1b   : > { %v375_v10 = vld [vmem:[%s2317_s18 + $0x28] sm:$0xff]  ;;  %v382_v11 = vld [vmem:[%s2317_s18 + $0x60] sm:$0xff]  ;;  %v376_v12 = vld [vmem:[%s2317_s18 + $0x30] sm:$0xff]  ;;  %vm1637_vm8 = vcmask 1045508   ;;  %vm1639_vm9 = vcmask 1043456   ;;  %p2076_p8 = scmp.ne.s32.totalorder %s2217_s24, 1 }
  0x1c   : > { %v383_v13 = vld [vmem:[%s2317_s18 + $0x68] sm:$0xff]  ;;  %v377_v14 = vld [vmem:[%s2317_s18 + $0x38] sm:$0xff]  ;;  %v384_v15 = vld [vmem:[%s2317_s18 + $0x70] sm:$0xff] }
  0x1d   : > { %v378_v16 = vld [vmem:[%s2317_s18 + $0x40] sm:$0xff]  ;;  %v385_v17 = vld [vmem:[%s2317_s18 + $0x78] sm:$0xff]  ;;  %v2081_v19 = vld [vmem:[%s2910_s3 + $0x10] sm:$0xff] }
  0x1e   : > { %v2082_v18 = vld [vmem:[%s2910_s3 + $0x18] sm:$0xff]  ;;  %v2080_v20 = vld [vmem:[%s2910_s3 + $0x8] sm:$0xff]  ;;  %v2079_v21 = vld [vmem:[%s2910_s3] sm:$0xff] }
  0x1f   : > { %598 = vmatpush.bf16.msra.mxu1 %v2082_v18  ;;  %2148 = vmatpush.bf16.msra.mxu2 %v2082_v18  ;;  %v2370_v23 = vld [vmem:[%s2909_s2] ss:$0 sm:$0xff]  ;;  %v2054_v47 = vld [vmem:[%s2912_s5 + $0x1c8] sm:$0xf]  ;;  %v2140_v54 = vld [vmem:[%s2912_s5 + $0x1cc] sm:$0xf] }
  0x20   : > { %v2144_v48 = vld [vmem:[%s2912_s5 + $0x1e4] sm:$0xf0]  ;;  %v2046_v49 = vld [vmem:[%s2912_s5 + $0x1c0] sm:$0xf]  ;;  %v2056_v55 = vld [vmem:[%s2912_s5 + $0x1e8] sm:$0xf0] }
  0x21   : > { %v2055_v52 = vor.u32 %v2144_v48, %v2054_v47  ;;  %v2143_v53 = vld [vmem:[%s2912_s5 + $0x1dc] sm:$0xf0]  ;;  %v2059_v58 = vor.u32 %v2140_v54, %v2056_v55  ;;  %v2022_v59 = vld [vmem:[%s2912_s5 + $0x188] sm:$0xf]  ;;  %v2139_v0 = vld [vmem:[%s2912_s5 + $0x1c4] sm:$0xf] }
  0x22   : > { %1781 = vmatmul.msk.f32.gmra.mxu0 %vm391_vm1, %v371_v3  ;;  %1790 = vmatmul.msk.f32.gmra.mxu3 %vm391_vm1, %v380_v7  ;;  %v2047_v57 = vor.u32 %v2143_v53, %v2046_v49  ;;  %v2136_v60 = vld [vmem:[%s2912_s5 + $0x1a4] sm:$0xf0]  ;;  %v2014_v61 = vld [vmem:[%s2912_s5 + $0x180] sm:$0xf]  ;;  %v2048_v1 = vld [vmem:[%s2912_s5 + $0x1e0] sm:$0xf0] }
  0x23   : > { %599 = vmatpush.bf16.msra.mxu1 %v2081_v19  ;;  %2149 = vmatpush.bf16.msra.mxu2 %v2081_v19  ;;  %v2023_v62 = vor.u32 %v2136_v60, %v2022_v59  ;;  %v2135_v63 = vld [vmem:[%s2912_s5 + $0x19c] sm:$0xf0]  ;;  %v2051_v5 = vor.u32 %v2139_v0, %v2048_v1  ;;  %v2016_v18 = vld [vmem:[%s2912_s5 + $0x1a0] sm:$0xf0]  ;;  %v2116_v48 = vld [vmem:[%s2912_s5 + $0x10c] sm:$0xf] }
  0x24   : > { %1149 = vmatpush.bf16.msrb.mxu0 %v2055_v52  ;;  %v1982_v19 = vld [vmem:[%s2912_s5 + $0x140] sm:$0xf]  ;;  %v1952_v47 = vld [vmem:[%s2912_s5 + $0x120] sm:$0xf0]  ;;  %v1926_v55 = vld [vmem:[%s2912_s5 + $0xc8] sm:$0xf] }
  0x25   : > { %1100 = vmatpush.bf16.msrb.mxu3 %v2051_v5  ;;  %v2111_v52 = vld [vmem:[%s2912_s5 + $0xdc] sm:$0xf0]  ;;  %v1920_v59 = vld [vmem:[%s2912_s5 + $0xe0] sm:$0xf0]  ;;  %v2108_v60 = vld [vmem:[%s2912_s5 + $0xcc] sm:$0xf] }
  0x26   : > { %v1886_v0 = vld [vmem:[%s2912_s5 + $0x80] sm:$0xf]  ;;  %v1894_v5 = vld [vmem:[%s2912_s5 + $0x88] sm:$0xf] }
  0x27   : > { %600 = vmatpush.bf16.msra.mxu1 %v2080_v20  ;;  %2150 = vmatpush.bf16.msra.mxu2 %v2080_v20  ;;  %v2127_v20 = vld [vmem:[%s2912_s5 + $0x15c] sm:$0xf0] }
  0x28   : > { %1150 = vmatpush.bf16.msrb.mxu0 %v2023_v62  ;;  %v2103_v1 = vld [vmem:[%s2912_s5 + $0x9c] sm:$0xf0] }
  0x2a   : > { %1782 = vmatmul.msk.f32.gmra.mxu0 %vm391_vm1, %v372_v4  ;;  %1791 = vmatmul.msk.f32.gmra.mxu3 %vm391_vm1, %v381_v9  ;;  %v2015_v4 = vor.u32 %v2135_v63, %v2014_v61  ;;  %v1928_v61 = vld [vmem:[%s2912_s5 + $0xe8] sm:$0xf0] }
  0x2b   : > { %601 = vmatpush.bf16.msra.mxu1 %v2079_v21  ;;  %2151 = vmatpush.bf16.msra.mxu2 %v2079_v21  ;;  %v1931_v63 = vor.u32 %v2108_v60, %v1928_v61  ;;  %v2030_v61 = vld [vmem:[%s2912_s5 + $0x190] sm:$0xf] }
  0x2f   : > { %1051 = vmatpush.bf16.msrb.mxu2 %v2047_v57  ;;  %1198 = vmatpush.bf16.msrb.mxu1 %v2059_v58  ;;  %v2107_v57 = vld [vmem:[%s2912_s5 + $0xc4] sm:$0xf] }
  0x30   : > { %v1923_v62 = vor.u32 %v2107_v57, %v1920_v59 }
  0x32   : > { %1783 = vmatmul.msk.f32.gmra.mxu0 %vm391_vm1, %v373_v6  ;;  %1792 = vmatmul.msk.f32.gmra.mxu3 %vm391_vm1, %v382_v11 }
  0x33   : > { %1052 = vmatpush.bf16.msrb.mxu2 %v2015_v4  ;;  %v1888_v4 = vld [vmem:[%s2912_s5 + $0xa0] sm:$0xf0] }
  0x3a   : > { %1784 = vmatmul.msk.f32.gmra.mxu0 %vm391_vm1, %v374_v8  ;;  %1793 = vmatmul.msk.f32.gmra.mxu3 %vm391_vm1, %v383_v13 }
  0x42   : > { %1785 = vmatmul.msk.f32.gmra.mxu0 %vm391_vm1, %v375_v10  ;;  %1794 = vmatmul.msk.f32.gmra.mxu3 %vm391_vm1, %v384_v15  ;;  %v2024_v15 = vld [vmem:[%s2912_s5 + $0x1a8] sm:$0xf0] }
  0x4a   : > { %1786 = vmatmul.msk.f32.gmra.mxu0 %vm391_vm1, %v376_v12  ;;  %1795 = vmatmul.msk.f32.gmra.mxu3 %vm391_vm1, %v385_v17 }
  0x52   : > { %1787 = vmatmul.msk.f32.gmra.mxu0 %vm391_vm1, %v377_v14  ;;  %v2132_v14 = vld [vmem:[%s2912_s5 + $0x18c] sm:$0xf] }
  0x53   : > { %v2027_v17 = vor.u32 %v2132_v14, %v2024_v15  ;;  %v2095_v14 = vld [vmem:[%s2912_s5 + $0x5c] sm:$0xf0] }
  0x55   : > { %1199 = vmatpush.bf16.msrb.mxu1 %v2027_v17 }
  0x5a   : > { %1788 = vmatmul.msk.f32.gmra.mxu0 %vm391_vm1, %v378_v16  ;;  %v2131_v16 = vld [vmem:[%s2912_s5 + $0x184] sm:$0xf] }
  0x5b   : > { %v2019_v21 = vor.u32 %v2131_v16, %v2016_v18 }
  0x5d   : > { %1101 = vmatpush.bf16.msrb.mxu3 %v2019_v21 }
  0x97   : > { %v461_v22 = vpop.f32.mrf.mxu0 }
  0x98   : > { %v462_v24 = vadd.f32 %v2370_v23, %v461_v22  ;;  %v1983_v22 = vor.u32 %v2127_v20, %v1982_v19 }
  0x9a   : > { %v509_v27 = vmax.f32 %v462_v24, 0.0  ;;  %v1990_v24 = vld [vmem:[%s2912_s5 + $0x148] sm:$0xf]  ;;  %1053 = vmatpush.bf16.msrb.mxu2 %v1983_v22 }
  0x9d   : > { %v488_v44 = vpop.f32.mrf.mxu3 }
  0x9e   : > { %v489_v7 = vadd.f32 %v2370_v23, %v488_v44 }
  0x9f   : > { %v464_v25 = vpop.f32.mrf.mxu0 }
  0xa0   : > { %v465_v26 = vadd.f32 %v2370_v23, %v464_v25  ;;  %v518_v9 = vmax.f32 %v489_v7, 0.0  ;;  %v2128_v25 = vld [vmem:[%s2912_s5 + $0x164] sm:$0xf0] }
  0xa2   : > { %v510_v28 = vmax.f32 %v465_v26, 0.0  ;;  %v2123_v26 = vld [vmem:[%s2912_s5 + $0x144] sm:$0xf] }
  0xa4   : > { %v525_v29 = vpack.c.bf16 %v510_v28, %v509_v27  ;;  %v1991_v27 = vor.u32 %v2128_v25, %v1990_v24  ;;  %v1984_v28 = vld [vmem:[%s2912_s5 + $0x160] sm:$0xf0] }
  0xa5   : > { %v2391_v51 = vpop.f32.mrf.mxu3  ;;  %v2091_v25 = vld [vmem:[%s2912_s5 + $0x44] sm:$0xf] }
  0xa6   : > { %1812 = vmatmul.msk.bf16.vlgmr.msra.gmra.mxu1 %vm569_vm2, %v525_v29  ;;  %v2124_v29 = vld [vmem:[%s2912_s5 + $0x14c] sm:$0xf]  ;;  %1151 = vmatpush.bf16.msrb.mxu0 %v1991_v27  ;;  %v1862_v27 = vld [vmem:[%s2912_s5 + $0x48] sm:$0xf] }
  0xa7   : > { %v467_v30 = vpop.f32.mrf.mxu0 }
  0xa8   : > { %v468_v31 = vadd.f32 %v2370_v23, %v467_v30  ;;  %v1992_v30 = vld [vmem:[%s2912_s5 + $0x168] sm:$0xf0] }
  0xaa   : > { %v511_v34 = vmax.f32 %v468_v31, 0.0  ;;  %v1987_v31 = vor.u32 %v2123_v26, %v1984_v28  ;;  %v1856_v26 = vld [vmem:[%s2912_s5 + $0x60] sm:$0xf0] }
  0xab   : > { %v1859_v28 = vor.u32 %v2091_v25, %v1856_v26  ;;  %v2130_v25 = vld [vmem:[%s2912_s5 + $0x174] sm:$0xf0] }
  0xac   : > { %1102 = vmatpush.bf16.msrb.mxu3 %v1987_v31 }
  0xad   : > { %v494_v11 = vpop.f32.mrf.mxu3 }
  0xaf   : > { %v470_v32 = vpop.f32.mrf.mxu0 }
  0xb0   : > { %v471_v33 = vadd.f32 %v2370_v23, %v470_v32  ;;  %v1995_v32 = vor.u32 %v2124_v29, %v1992_v30  ;;  %v2096_v29 = vld [vmem:[%s2912_s5 + $0x64] sm:$0xf0]  ;;  %v1864_v30 = vld [vmem:[%s2912_s5 + $0x68] sm:$0xf0] }
  0xb2   : > { %v512_v35 = vmax.f32 %v471_v33, 0.0  ;;  %v1950_v33 = vld [vmem:[%s2912_s5 + $0x100] sm:$0xf]  ;;  %1200 = vmatpush.bf16.msrb.mxu1 %v1995_v32 }
  0xb4   : > { %v526_v36 = vpack.c.bf16 %v512_v35, %v511_v34  ;;  %v2119_v34 = vld [vmem:[%s2912_s5 + $0x11c] sm:$0xf0]  ;;  %v1958_v35 = vld [vmem:[%s2912_s5 + $0x108] sm:$0xf] }
  0xb6   : > { %1813 = vmatmul.msk.bf16.gmra.mxu1 %vm569_vm2, %v526_v36  ;;  %v497_v36 = vpop.f32.mrf.mxu3 }
  0xb7   : > { %v473_v37 = vpop.f32.mrf.mxu0  ;;  %v498_v7 = vadd.f32 %v2370_v23, %v497_v36  ;;  %v2087_v36 = vld [vmem:[%s2912_s5 + $0x1c] sm:$0xf0] }
  0xb8   : > { %v474_v38 = vadd.f32 %v2370_v23, %v473_v37  ;;  %v1951_v37 = vor.u32 %v2119_v34, %v1950_v33  ;;  %v1863_v33 = vor.u32 %v2096_v29, %v1862_v27  ;;  %v2126_v27 = vld [vmem:[%s2912_s5 + $0x15c] sm:$0xf] }
  0xb9   : > { %v521_v18 = vmax.f32 %v498_v7, 0.0  ;;  %v2134_v7 = vld [vmem:[%s2912_s5 + $0x19c] sm:$0xf] }
  0xba   : > { %v513_v41 = vmax.f32 %v474_v38, 0.0  ;;  %v2120_v38 = vld [vmem:[%s2912_s5 + $0x124] sm:$0xf0]  ;;  %1054 = vmatpush.bf16.msrb.mxu2 %v1951_v37 }
  0xbf   : > { %v476_v39 = vpop.f32.mrf.mxu0 }
  0xc0   : > { %v477_v40 = vadd.f32 %v2370_v23, %v476_v39  ;;  %v492_v39 = vadd.f32 %v2370_v23, %v2391_v51  ;;  %v1918_v51 = vld [vmem:[%s2912_s5 + $0xc0] sm:$0xf] }
  0xc1   : > { %v1919_v54 = vor.u32 %v2111_v52, %v1918_v51  ;;  %v2064_v52 = vld [vmem:[%s2912_s5 + $0x1f0] sm:$0xf0] }
  0xc2   : > { %v514_v42 = vmax.f32 %v477_v40, 0.0  ;;  %v495_v40 = vadd.f32 %v2370_v23, %v494_v11  ;;  %v1896_v11 = vld [vmem:[%s2912_s5 + $0xa8] sm:$0xf0] }
  0xc3   : > { %1055 = vmatpush.bf16.msrb.mxu2 %v1919_v54  ;;  %v2070_v54 = vld [vmem:[%s2912_s5 + $0x1d8] sm:$0xf] }
  0xc4   : > { %v527_v43 = vpack.c.bf16 %v514_v42, %v513_v41  ;;  %v1959_v41 = vor.u32 %v2120_v38, %v1958_v35  ;;  %v519_v42 = vmax.f32 %v492_v39, 0.0  ;;  %v1822_v35 = vld [vmem:[%s2912_s5] sm:$0xf]  ;;  %v2083_v39 = vld [vmem:[%s2912_s5 + $0x4] sm:$0xf] }
  0xc5   : > { %v1823_v37 = vor.u32 %v2087_v36, %v1822_v35  ;;  %v1966_v36 = vld [vmem:[%s2912_s5 + $0x110] sm:$0xf] }
  0xc6   : > { %1814 = vmatmul.msk.bf16.gmra.mxu1 %vm569_vm2, %v527_v43  ;;  %1152 = vmatpush.bf16.msrb.mxu0 %v1959_v41  ;;  %v520_v43 = vmax.f32 %v495_v40, 0.0  ;;  %v1824_v40 = vld [vmem:[%s2912_s5 + $0x20] sm:$0xf0]  ;;  %v1830_v41 = vld [vmem:[%s2912_s5 + $0x8] sm:$0xf] }
  0xc7   : > { %v479_v45 = vpop.f32.mrf.mxu0 }
  0xc8   : > { %v480_v46 = vadd.f32 %v2370_v23, %v479_v45  ;;  %v530_v44 = vpack.c.bf16 %v520_v43, %v519_v42  ;;  %v500_v45 = vpop.f32.mrf.mxu3  ;;  %v1827_v42 = vor.u32 %v2083_v39, %v1824_v40  ;;  %v2088_v43 = vld [vmem:[%s2912_s5 + $0x24] sm:$0xf0]  ;;  %v1968_v40 = vld [vmem:[%s2912_s5 + $0x130] sm:$0xf0] }
  0xca   : > { %v515_v2 = vmax.f32 %v480_v46, 0.0  ;;  %v2115_v46 = vld [vmem:[%s2912_s5 + $0x104] sm:$0xf] }
  0xcb   : > { %v1955_v49 = vor.u32 %v2115_v46, %v1952_v47  ;;  %v1831_v46 = vor.u32 %v2088_v43, %v1830_v41  ;;  %v1974_v41 = vld [vmem:[%s2912_s5 + $0x118] sm:$0xf] }
  0xcd   : > { %1103 = vmatpush.bf16.msrb.mxu3 %v1955_v49  ;;  %v2145_v49 = vld [vmem:[%s2912_s5 + $0x1ec] sm:$0xf0] }
  0xcf   : > { %v482_v50 = vpop.f32.mrf.mxu0 }
  0xd0   : > { %v483_v56 = vadd.f32 %v2370_v23, %v482_v50  ;;  %v1960_v50 = vld [vmem:[%s2912_s5 + $0x128] sm:$0xf0]  ;;  %v503_v17 = vpop.f32.mrf.mxu3 }
  0xd1   : > { %v1963_v53 = vor.u32 %v2116_v48, %v1960_v50  ;;  %1104 = vmatpush.bf16.msrb.mxu3 %v1923_v62  ;;  %v504_v22 = vadd.f32 %v2370_v23, %v503_v17  ;;  %v2062_v48 = vld [vmem:[%s2912_s5 + $0x1d0] sm:$0xf]  ;;  %v2141_v50 = vld [vmem:[%s2912_s5 + $0x1d4] sm:$0xf] }
  0xd2   : > { %v516_v3 = vmax.f32 %v483_v56, 0.0  ;;  %v2112_v56 = vld [vmem:[%s2912_s5 + $0xe4] sm:$0xf0]  ;;  %v2063_v51 = vor.u32 %v2145_v49, %v2062_v48  ;;  %v2137_v62 = vld [vmem:[%s2912_s5 + $0x1ac] sm:$0xf0] }
  0xd3   : > { %v1927_v58 = vor.u32 %v2112_v56, %v1926_v55  ;;  %1201 = vmatpush.bf16.msrb.mxu1 %v1963_v53  ;;  %v523_v31 = vmax.f32 %v504_v22, 0.0  ;;  %v2067_v53 = vor.u32 %v2141_v50, %v2064_v52  ;;  %v2146_v55 = vld [vmem:[%s2912_s5 + $0x1f4] sm:$0xf0]  ;;  %v2142_v56 = vld [vmem:[%s2912_s5 + $0x1dc] sm:$0xf] }
  0xd4   : > { %v528_v6 = vpack.c.bf16 %v516_v3, %v515_v2  ;;  %v2099_v2 = vld [vmem:[%s2912_s5 + $0x84] sm:$0xf]  ;;  %v1887_v3 = vor.u32 %v2103_v1, %v1886_v0  ;;  %v2071_v57 = vor.u32 %v2146_v55, %v2070_v54  ;;  %v2031_v0 = vor.u32 %v2137_v62, %v2030_v61  ;;  %v2032_v1 = vld [vmem:[%s2912_s5 + $0x1b0] sm:$0xf0]  ;;  %v1998_v17 = vld [vmem:[%s2912_s5 + $0x150] sm:$0xf] }
  0xd5   : > { %1153 = vmatpush.bf16.msrb.mxu0 %v1927_v58  ;;  %v2072_v58 = vld [vmem:[%s2912_s5 + $0x1f8] sm:$0xf0]  ;;  %v1934_v55 = vld [vmem:[%s2912_s5 + $0xd0] sm:$0xf]  ;;  %v2114_v61 = vld [vmem:[%s2912_s5 + $0xf4] sm:$0xf0] }
  0xd6   : > { %1815 = vmatmul.msk.bf16.gmra.mxu1 %vm569_vm2, %v528_v6  ;;  %v2104_v6 = vld [vmem:[%s2912_s5 + $0xa4] sm:$0xf0]  ;;  %1056 = vmatpush.bf16.msrb.mxu2 %v1887_v3  ;;  %v2075_v59 = vor.u32 %v2142_v56, %v2072_v58  ;;  %v2630_v3 = vld [vmem:[%s2911_s4] ss:$0 sm:$0xff]  ;;  %v2113_v56 = vld [vmem:[%s2912_s5 + $0xec] sm:$0xf0] }
  0xd7   : > { %v485_v8 = vpop.f32.mrf.mxu0  ;;  %1202 = vmatpush.bf16.msrb.mxu1 %v1931_v63  ;;  %v2133_v63 = vld [vmem:[%s2912_s5 + $0x194] sm:$0xf]  ;;  %v1935_v58 = vor.u32 %v2113_v56, %v1934_v55 }
  0xd8   : > { %v486_v10 = vadd.f32 %v2370_v23, %v485_v8  ;;  %v501_v8 = vadd.f32 %v2370_v23, %v500_v45  ;;  %v506_v21 = vpop.f32.mrf.mxu3  ;;  %v1832_v45 = vld [vmem:[%s2912_s5 + $0x28] sm:$0xf0]  ;;  %v1840_v56 = vld [vmem:[%s2912_s5 + $0x30] sm:$0xf0] }
  0xd9   : > { %v507_v24 = vadd.f32 %v2370_v23, %v506_v21  ;;  %v2092_v23 = vld [vmem:[%s2912_s5 + $0x4c] sm:$0xf]  ;;  %v2000_v21 = vld [vmem:[%s2912_s5 + $0x170] sm:$0xf0] }
  0xda   : > { %v517_v12 = vmax.f32 %v486_v10, 0.0  ;;  %v2100_v10 = vld [vmem:[%s2912_s5 + $0x8c] sm:$0xf]  ;;  %v522_v19 = vmax.f32 %v501_v8, 0.0  ;;  %v1867_v34 = vor.u32 %v2092_v23, %v1864_v30  ;;  %v2040_v8 = vld [vmem:[%s2912_s5 + $0x1b8] sm:$0xf0] }
  0xdb   : > { %v1899_v15 = vor.u32 %v2100_v10, %v1896_v11  ;;  %v524_v32 = vmax.f32 %v507_v24, 0.0  ;;  %v2006_v24 = vld [vmem:[%s2912_s5 + $0x158] sm:$0xf] }
  0xdc   : > { %v529_v13 = vpack.c.bf16 %v518_v9, %v517_v12  ;;  %v1895_v9 = vor.u32 %v2104_v6, %v1894_v5  ;;  %v1854_v12 = vld [vmem:[%s2912_s5 + $0x40] sm:$0xf]  ;;  %v531_v20 = vpack.c.bf16 %v522_v19, %v521_v18  ;;  %v2138_v5 = vld [vmem:[%s2912_s5 + $0x1b4] sm:$0xf0]  ;;  %v2129_v18 = vld [vmem:[%s2912_s5 + $0x16c] sm:$0xf0]  ;;  %v2007_v26 = vor.u32 %v2130_v25, %v2006_v24 }
  0xdd   : > { %v1855_v16 = vor.u32 %v2095_v14, %v1854_v12  ;;  %1203 = vmatpush.bf16.msrb.mxu1 %v1899_v15  ;;  %v532_v38 = vpack.c.bf16 %v524_v32, %v523_v31  ;;  %v2125_v19 = vld [vmem:[%s2912_s5 + $0x154] sm:$0xf] }
  0xde   : > { %1816 = vmatmul.msk.bf16.vlgmr.msra.gmra.mxu2 %vm569_vm2, %v529_v13  ;;  %v1891_v13 = vor.u32 %v2099_v2, %v1888_v4  ;;  %1154 = vmatpush.bf16.msrb.mxu0 %v1895_v9  ;;  %v2035_v2 = vor.u32 %v2133_v63, %v2032_v1  ;;  %v2038_v4 = vld [vmem:[%s2912_s5 + $0x198] sm:$0xf]  ;;  %v2043_v9 = vor.u32 %v2134_v7, %v2040_v8  ;;  %v1944_v1 = vld [vmem:[%s2912_s5 + $0xf8] sm:$0xf0] }
  0xdf   : > { %1057 = vmatpush.bf16.msrb.mxu2 %v1855_v16  ;;  %v2039_v6 = vor.u32 %v2138_v5, %v2038_v4  ;;  %v2003_v22 = vor.u32 %v2125_v19, %v2000_v21  ;;  %v2106_v19 = vld [vmem:[%s2912_s5 + $0xb4] sm:$0xf0]  ;;  %v1912_v21 = vld [vmem:[%s2912_s5 + $0xb8] sm:$0xf0] }
  0xe0   : > { %1105 = vmatpush.bf16.msrb.mxu3 %v1891_v13 }
  0xe1   : > { %1204 = vmatpush.bf16.msrb.mxu1 %v1867_v34 }
  0xe2   : > { %1155 = vmatpush.bf16.msrb.mxu0 %v1863_v33 }
  0xe3   : > { %1058 = vmatpush.bf16.msrb.mxu2 %v1823_v37  ;;  %v2121_v37 = vld [vmem:[%s2912_s5 + $0x12c] sm:$0xf0] }
  0xe4   : > { %1106 = vmatpush.bf16.msrb.mxu3 %v1859_v28  ;;  %v2008_v28 = vld [vmem:[%s2912_s5 + $0x178] sm:$0xf0]  ;;  %v1967_v39 = vor.u32 %v2121_v37, %v1966_v36  ;;  %v1872_v36 = vld [vmem:[%s2912_s5 + $0x70] sm:$0xf0]  ;;  %v1878_v37 = vld [vmem:[%s2912_s5 + $0x58] sm:$0xf] }
  0xe5   : > { %v2011_v29 = vor.u32 %v2126_v27, %v2008_v28 }
  0xe6   : > { %1156 = vmatpush.bf16.msrb.mxu0 %v1831_v46  ;;  %v1976_v46 = vld [vmem:[%s2912_s5 + $0x138] sm:$0xf0] }
  0xe7   : > { %1247 = vmatpush.bf16.msra.mxu2 %v2063_v51 }
  0xe8   : > { %1107 = vmatpush.bf16.msrb.mxu3 %v1827_v42  ;;  %v2122_v42 = vld [vmem:[%s2912_s5 + $0x134] sm:$0xf0] }
  0xea   : > { %1345 = vmatpush.bf16.msra.mxu0 %v2071_v57  ;;  %v2109_v57 = vld [vmem:[%s2912_s5 + $0xd4] sm:$0xf] }
  0xeb   : > { %1248 = vmatpush.bf16.msra.mxu2 %v2031_v0  ;;  %v2110_v0 = vld [vmem:[%s2912_s5 + $0xdc] sm:$0xf] }
  0xec   : > { %1296 = vmatpush.bf16.msra.mxu3 %v2067_v53 }
  0xee   : > { %1817 = vmatmul.msk.bf16.gmra.mxu2 %vm569_vm2, %v530_v44  ;;  %v2084_v44 = vld [vmem:[%s2912_s5 + $0xc] sm:$0xf]  ;;  %1346 = vmatpush.bf16.msra.mxu0 %v2039_v6 }
  0xef   : > { %v1835_v47 = vor.u32 %v2084_v44, %v1832_v45  ;;  %v1975_v44 = vor.u32 %v2122_v42, %v1974_v41  ;;  %v2118_v45 = vld [vmem:[%s2912_s5 + $0x11c] sm:$0xf] }
  0xf0   : > { %1297 = vmatpush.bf16.msra.mxu3 %v2035_v2  ;;  %v1947_v2 = vor.u32 %v2110_v0, %v1944_v1  ;;  %v1880_v41 = vld [vmem:[%s2912_s5 + $0x78] sm:$0xf0] }
  0xf1   : > { %1205 = vmatpush.bf16.msrb.mxu1 %v1835_v47  ;;  %v1979_v47 = vor.u32 %v2118_v45, %v1976_v46 }
  0xf2   : > { %1347 = vmatpush.bf16.msra.mxu0 %v2007_v26 }
  0xf4   : > { %1298 = vmatpush.bf16.msra.mxu3 %v2003_v22 }
  0xf5   : > { %1394 = vmatpush.bf16.msra.mxu1 %v2075_v59  ;;  %v1936_v59 = vld [vmem:[%s2912_s5 + $0xf0] sm:$0xf0] }
  0xf6   : > { %1348 = vmatpush.bf16.msra.mxu0 %v1975_v44  ;;  %v1939_v62 = vor.u32 %v2109_v57, %v1936_v59  ;;  %v1846_v57 = vld [vmem:[%s2912_s5 + $0x18] sm:$0xf] }
  0xf7   : > { %v2090_v59 = vld [vmem:[%s2912_s5 + $0x34] sm:$0xf0] }
  0xf9   : > { %1395 = vmatpush.bf16.msra.mxu1 %v2043_v9 }
  0xfd   : > { %1396 = vmatpush.bf16.msra.mxu1 %v2011_v29 }
  0xfe   : > { %1818 = vmatmul.msk.bf16.gmra.mxu2 %vm569_vm2, %v531_v20  ;;  %v1999_v20 = vor.u32 %v2129_v18, %v1998_v17  ;;  %v1910_v17 = vld [vmem:[%s2912_s5 + $0x98] sm:$0xf] }
  0xff   : > { %v1911_v22 = vor.u32 %v2106_v19, %v1910_v17 }
 0x100   : > { %1249 = vmatpush.bf16.msra.mxu2 %v1999_v20  ;;  %v2102_v20 = vld [vmem:[%s2912_s5 + $0x9c] sm:$0xf] }
 0x101   : > { %1397 = vmatpush.bf16.msra.mxu1 %v1979_v47  ;;  %v1915_v24 = vor.u32 %v2102_v20, %v1912_v21 }
 0x104   : > { %1250 = vmatpush.bf16.msra.mxu2 %v1967_v39  ;;  %v2098_v39 = vld [vmem:[%s2912_s5 + $0x74] sm:$0xf0] }
 0x105   : > { %1398 = vmatpush.bf16.msra.mxu1 %v1947_v2  ;;  %v1879_v42 = vor.u32 %v2098_v39, %v1878_v37 }
 0x108   : > { %1251 = vmatpush.bf16.msra.mxu2 %v1935_v58 }
 0x109   : > { %1399 = vmatpush.bf16.msra.mxu1 %v1915_v24 }
 0x10e   : > { %1819 = vmatmul.msk.bf16.gmra.mxu2 %vm569_vm2, %v532_v38  ;;  %v2117_v38 = vld [vmem:[%s2912_s5 + $0x114] sm:$0xf] }
 0x10f   : > { %v1971_v43 = vor.u32 %v2117_v38, %v1968_v40  ;;  %v2094_v40 = vld [vmem:[%s2912_s5 + $0x5c] sm:$0xf] }
 0x111   : > { %1299 = vmatpush.bf16.msra.mxu3 %v1971_v43  ;;  %v1883_v43 = vor.u32 %v2094_v40, %v1880_v41 }
 0x113   : > { %1400 = vmatpush.bf16.msra.mxu1 %v1883_v43 }
 0x115   : > { %1300 = vmatpush.bf16.msra.mxu3 %v1939_v62  ;;  %v1847_v62 = vor.u32 %v2090_v59, %v1846_v57 }
 0x123   : > { %v603_v60 = vpop.f32.mrf.mxu1 }
 0x124   : > { %v604_v10 = vadd.f32 %v2630_v3, %v603_v60  ;;  %v1942_v60 = vld [vmem:[%s2912_s5 + $0xd8] sm:$0xf] }
 0x125   : > { %v1943_v63 = vor.u32 %v2114_v61, %v1942_v60  ;;  %v2086_v60 = vld [vmem:[%s2912_s5 + $0x1c] sm:$0xf] }
 0x126   : > { %v643_v13 = vmax.f32 %v604_v10, 0.0  ;;  %v1848_v61 = vld [vmem:[%s2912_s5 + $0x38] sm:$0xf0] }
 0x127   : > { %1349 = vmatpush.bf16.msra.mxu0 %v1943_v63  ;;  %v1851_v63 = vor.u32 %v2086_v60, %v1848_v61 }
 0x129   : > { %1401 = vmatpush.bf16.msra.mxu1 %v1851_v63 }
 0x12b   : > { %v605_v11 = vpop.f32.mrf.mxu1  ;;  %1350 = vmatpush.bf16.msra.mxu0 %v1911_v22 }
 0x12c   : > { %v606_v12 = vadd.f32 %v2630_v3, %v605_v11  ;;  %v1902_v11 = vld [vmem:[%s2912_s5 + $0x90] sm:$0xf] }
 0x12e   : > { %v644_v14 = vmax.f32 %v606_v12, 0.0  ;;  %v2105_v12 = vld [vmem:[%s2912_s5 + $0xac] sm:$0xf0] }
 0x12f   : > { %1351 = vmatpush.bf16.msra.mxu0 %v1879_v42 }
 0x130   : > { %v2646_v15 = vpack.c.bf16 %v644_v14, %v643_v13  ;;  %v1903_v13 = vor.u32 %v2105_v12, %v1902_v11  ;;  %v2101_v14 = vld [vmem:[%s2912_s5 + $0x94] sm:$0xf] }
 0x132   : > { %1059 = vmatmul.bf16.vlgmr.msrb.gmra.mxu2 %v2646_v15  ;;  %1108 = vmatmul.bf16.vlgmr.msrb.gmra.mxu3 %v2646_v15 }
 0x133   : > { %1157 = vmatmul.bf16.vlgmr.msrb.gmra.mxu0 %v2646_v15  ;;  %1206 = vmatmul.bf16.vlgmr.msrb.gmra.mxu1 %v2646_v15  ;;  %v608_v16 = vpop.f32.mrf.mxu1 }
 0x134   : > { %v609_v23 = vadd.f32 %v2630_v3, %v608_v16  ;;  %v1904_v16 = vld [vmem:[%s2912_s5 + $0xb0] sm:$0xf0]  ;;  %1252 = vmatpush.bf16.msra.mxu2 %v1903_v13  ;;  %1352 = vmatpush.bf16.msra.mxu0 %v1847_v62 }
 0x135   : > { %v1907_v18 = vor.u32 %v2101_v14, %v1904_v16 }
 0x136   : > { %v645_v32 = vmax.f32 %v609_v23, 0.0 }
 0x137   : > { %1301 = vmatpush.bf16.msra.mxu3 %v1907_v18 }
 0x13b   : > { %v610_v30 = vpop.f32.mrf.mxu1 }
 0x13c   : > { %v611_v31 = vadd.f32 %v2630_v3, %v610_v30 }
 0x13e   : > { %v646_v33 = vmax.f32 %v611_v31, 0.0  ;;  %v1870_v31 = vld [vmem:[%s2912_s5 + $0x50] sm:$0xf] }
 0x140   : > { %v2678_v34 = vpack.c.bf16 %v646_v33, %v645_v32  ;;  %v2097_v32 = vld [vmem:[%s2912_s5 + $0x6c] sm:$0xf0] }
 0x141   : > { %v1871_v33 = vor.u32 %v2097_v32, %v1870_v31 }
 0x142   : > { %1064 = vmatmul.bf16.gmra.mxu2 %v2678_v34  ;;  %1113 = vmatmul.bf16.gmra.mxu3 %v2678_v34 }
 0x143   : > { %1162 = vmatmul.bf16.gmra.mxu0 %v2678_v34  ;;  %1211 = vmatmul.bf16.gmra.mxu1 %v2678_v34  ;;  %v613_v35 = vpop.f32.mrf.mxu1 }
 0x144   : > { %v614_v48 = vadd.f32 %v2630_v3, %v613_v35  ;;  %v2093_v35 = vld [vmem:[%s2912_s5 + $0x54] sm:$0xf]  ;;  %1253 = vmatpush.bf16.msra.mxu2 %v1871_v33 }
 0x145   : > { %v1875_v38 = vor.u32 %v2093_v35, %v1872_v36 }
 0x146   : > { %v647_v51 = vmax.f32 %v614_v48, 0.0 }
 0x147   : > { %1302 = vmatpush.bf16.msra.mxu3 %v1875_v38 }
 0x14b   : > { %v615_v49 = vpop.f32.mrf.mxu1 }
 0x14c   : > { %v616_v50 = vadd.f32 %v2630_v3, %v615_v49 }
 0x14e   : > { %v648_v52 = vmax.f32 %v616_v50, 0.0 }
 0x150   : > { %v2710_v53 = vpack.c.bf16 %v648_v52, %v647_v51  ;;  %v1838_v51 = vld [vmem:[%s2912_s5 + $0x10] sm:$0xf] }
 0x151   : > { %v2089_v52 = vld [vmem:[%s2912_s5 + $0x2c] sm:$0xf0] }
 0x152   : > { %1069 = vmatmul.bf16.gmra.mxu2 %v2710_v53  ;;  %1118 = vmatmul.bf16.gmra.mxu3 %v2710_v53  ;;  %v1839_v55 = vor.u32 %v2089_v52, %v1838_v51 }
 0x153   : > { %1167 = vmatmul.bf16.gmra.mxu0 %v2710_v53  ;;  %1216 = vmatmul.bf16.gmra.mxu1 %v2710_v53  ;;  %v618_v54 = vpop.f32.mrf.mxu1 }
 0x154   : > { %v619_v4 = vadd.f32 %v2630_v3, %v618_v54  ;;  %v2085_v54 = vld [vmem:[%s2912_s5 + $0x14] sm:$0xf]  ;;  %1254 = vmatpush.bf16.msra.mxu2 %v1839_v55 }
 0x155   : > { %v1843_v58 = vor.u32 %v2085_v54, %v1840_v56 }
 0x156   : > { %v649_v7 = vmax.f32 %v619_v4, 0.0 }
 0x157   : > { %1303 = vmatpush.bf16.msra.mxu3 %v1843_v58 }
 0x15b   : > { %v620_v5 = vpop.f32.mrf.mxu1 }
 0x15c   : > { %v621_v6 = vadd.f32 %v2630_v3, %v620_v5 }
 0x15e   : > { %v650_v8 = vmax.f32 %v621_v6, 0.0 }
 0x160   : > { %v2742_v9 = vpack.c.bf16 %v650_v8, %v649_v7 }
 0x161   : > { %v623_v10 = vpop.f32.mrf.mxu2 }
 0x162   : > { %1074 = vmatmul.bf16.gmra.mxu2 %v2742_v9  ;;  %1123 = vmatmul.bf16.gmra.mxu3 %v2742_v9  ;;  %v624_v26 = vadd.f32 %v2630_v3, %v623_v10 }
 0x163   : > { %1172 = vmatmul.bf16.gmra.mxu0 %v2742_v9  ;;  %1221 = vmatmul.bf16.gmra.mxu1 %v2742_v9 }
 0x164   : > { %v651_v29 = vmax.f32 %v624_v26, 0.0 }
 0x169   : > { %v625_v25 = vpop.f32.mrf.mxu2 }
 0x16a   : > { %v626_v27 = vadd.f32 %v2630_v3, %v625_v25 }
 0x16c   : > { %v652_v28 = vmax.f32 %v626_v27, 0.0 }
 0x16e   : > { %v2774_v23 = vpack.c.bf16 %v652_v28, %v651_v29 }
 0x171   : > { %v628_v30 = vpop.f32.mrf.mxu2 }
 0x172   : > { %1079 = vmatmul.bf16.gmra.mxu2 %v2774_v23  ;;  %1128 = vmatmul.bf16.gmra.mxu3 %v2774_v23  ;;  %v629_v45 = vadd.f32 %v2630_v3, %v628_v30 }
 0x173   : > { %1177 = vmatmul.bf16.gmra.mxu0 %v2774_v23  ;;  %1226 = vmatmul.bf16.gmra.mxu1 %v2774_v23 }
 0x174   : > { %v653_v48 = vmax.f32 %v629_v45, 0.0 }
 0x179   : > { %v630_v44 = vpop.f32.mrf.mxu2 }
 0x17a   : > { %v631_v46 = vadd.f32 %v2630_v3, %v630_v44 }
 0x17c   : > { %v654_v47 = vmax.f32 %v631_v46, 0.0 }
 0x17e   : > { %v2806_v49 = vpack.c.bf16 %v654_v47, %v653_v48 }
 0x181   : > { %v633_v50 = vpop.f32.mrf.mxu2 }
 0x182   : > { %1084 = vmatmul.bf16.gmra.mxu2 %v2806_v49  ;;  %1133 = vmatmul.bf16.gmra.mxu3 %v2806_v49  ;;  %v634_v1 = vadd.f32 %v2630_v3, %v633_v50 }
 0x183   : > { %1182 = vmatmul.bf16.gmra.mxu0 %v2806_v49  ;;  %1231 = vmatmul.bf16.gmra.mxu1 %v2806_v49 }
 0x184   : > { %v655_v5 = vmax.f32 %v634_v1, 0.0 }
 0x189   : > { %v635_v0 = vpop.f32.mrf.mxu2 }
 0x18a   : > { %v636_v2 = vadd.f32 %v2630_v3, %v635_v0 }
 0x18c   : > { %v656_v4 = vmax.f32 %v636_v2, 0.0 }
 0x18e   : > { %v2838_v6 = vpack.c.bf16 %v656_v4, %v655_v5 }
 0x191   : > { %v638_v7 = vpop.f32.mrf.mxu2 }
 0x192   : > { %1089 = vmatmul.bf16.gmra.mxu2 %v2838_v6  ;;  %1138 = vmatmul.bf16.gmra.mxu3 %v2838_v6  ;;  %v639_v10 = vadd.f32 %v2630_v3, %v638_v7 }
 0x193   : > { %1187 = vmatmul.bf16.gmra.mxu0 %v2838_v6  ;;  %1236 = vmatmul.bf16.gmra.mxu1 %v2838_v6 }
 0x194   : > { %v657_v13 = vmax.f32 %v639_v10, 0.0 }
 0x199   : > { %v640_v8 = vpop.f32.mrf.mxu2 }
 0x19a   : > { %v641_v11 = vadd.f32 %v2630_v3, %v640_v8 }
 0x19c   : > { %v658_v12 = vmax.f32 %v641_v11, 0.0 }
 0x19e   : > { %v2846_v14 = vpack.c.bf16 %v658_v12, %v657_v13 }
 0x1a2   : > { %1094 = vmatmul.bf16.gmra.mxu2 %v2846_v14  ;;  %1143 = vmatmul.bf16.gmra.mxu3 %v2846_v14 }
 0x1a3   : > { %1192 = vmatmul.bf16.gmra.mxu0 %v2846_v14  ;;  %1241 = vmatmul.bf16.gmra.mxu1 %v2846_v14 }
 0x1b0   : > { %v1158_v16 = vpop.f32.mrf.mxu0  ;;  %v1207_v17 = vpop.f32.mrf.mxu1 }
 0x1b2   : > { %1255 = vmatmul.bf16.vlgmr.msra.gmra.mxu2 %v2646_v15  ;;  %1304 = vmatmul.bf16.vlgmr.msra.gmra.mxu3 %v2646_v15 }
 0x1b3   : > { %1353 = vmatmul.bf16.vlgmr.msra.gmra.mxu0 %v2646_v15  ;;  %1402 = vmatmul.bf16.vlgmr.msra.gmra.mxu1 %v2646_v15 }
 0x1b5   : > { %v1060_v3 = vpop.f32.mrf.mxu2  ;;  %v1109_v18 = vpop.f32.mrf.mxu3 }
 0x1b8   : > { %v1160_v19 = vpop.f32.mrf.mxu0  ;;  %v1209_v20 = vpop.f32.mrf.mxu1 }
 0x1b9   : > { %v1486_v21 = vmax.f32 %v1158_v16, %v1160_v19  ;;  %v1507_v22 = vmax.f32 %v1207_v17, %v1209_v20 }
 0x1bd   : > { %v1062_v24 = vpop.f32.mrf.mxu2  ;;  %v1111_v25 = vpop.f32.mrf.mxu3 }
 0x1be   : > { %v1444_v26 = vmax.f32 %v1060_v3, %v1062_v24  ;;  %v1465_v27 = vmax.f32 %v1109_v18, %v1111_v25 }
 0x1c0   : > { %v1163_v28 = vpop.f32.mrf.mxu0  ;;  %v1212_v29 = vpop.f32.mrf.mxu1 }
 0x1c1   : > { %v1487_v30 = vmax.f32 %v1486_v21, %v1163_v28  ;;  %v1508_v31 = vmax.f32 %v1507_v22, %v1212_v29 }
 0x1c2   : > { %1260 = vmatmul.bf16.gmra.mxu2 %v2678_v34  ;;  %1309 = vmatmul.bf16.gmra.mxu3 %v2678_v34 }
 0x1c3   : > { %1358 = vmatmul.bf16.gmra.mxu0 %v2678_v34  ;;  %1407 = vmatmul.bf16.gmra.mxu1 %v2678_v34 }
 0x1c5   : > { %v1065_v15 = vpop.f32.mrf.mxu2  ;;  %v1114_v32 = vpop.f32.mrf.mxu3 }
 0x1c6   : > { %v1445_v33 = vmax.f32 %v1444_v26, %v1065_v15  ;;  %v1466_v35 = vmax.f32 %v1465_v27, %v1114_v32 }
 0x1c8   : > { %v1165_v36 = vpop.f32.mrf.mxu0  ;;  %v1214_v37 = vpop.f32.mrf.mxu1 }
 0x1c9   : > { %v1488_v38 = vmax.f32 %v1487_v30, %v1165_v36  ;;  %v1509_v39 = vmax.f32 %v1508_v31, %v1214_v37 }
 0x1cd   : > { %v1067_v40 = vpop.f32.mrf.mxu2  ;;  %v1116_v41 = vpop.f32.mrf.mxu3 }
 0x1ce   : > { %v1446_v42 = vmax.f32 %v1445_v33, %v1067_v40  ;;  %v1467_v43 = vmax.f32 %v1466_v35, %v1116_v41 }
 0x1d0   : > { %v1168_v44 = vpop.f32.mrf.mxu0  ;;  %v1217_v45 = vpop.f32.mrf.mxu1 }
 0x1d1   : > { %v1489_v46 = vmax.f32 %v1488_v38, %v1168_v44  ;;  %v1510_v47 = vmax.f32 %v1509_v39, %v1217_v45 }
 0x1d2   : > { %1265 = vmatmul.bf16.gmra.mxu2 %v2710_v53  ;;  %1314 = vmatmul.bf16.gmra.mxu3 %v2710_v53 }
 0x1d3   : > { %1363 = vmatmul.bf16.gmra.mxu0 %v2710_v53  ;;  %1412 = vmatmul.bf16.gmra.mxu1 %v2710_v53 }
 0x1d5   : > { %v1070_v34 = vpop.f32.mrf.mxu2  ;;  %v1119_v48 = vpop.f32.mrf.mxu3 }
 0x1d6   : > { %v1447_v50 = vmax.f32 %v1446_v42, %v1070_v34  ;;  %v1468_v51 = vmax.f32 %v1467_v43, %v1119_v48 }
 0x1d8   : > { %v1170_v52 = vpop.f32.mrf.mxu0  ;;  %v1219_v54 = vpop.f32.mrf.mxu1 }
 0x1d9   : > { %v1490_v55 = vmax.f32 %v1489_v46, %v1170_v52  ;;  %v1511_v56 = vmax.f32 %v1510_v47, %v1219_v54 }
 0x1dd   : > { %v1072_v57 = vpop.f32.mrf.mxu2  ;;  %v1121_v58 = vpop.f32.mrf.mxu3 }
 0x1de   : > { %v1448_v59 = vmax.f32 %v1447_v50, %v1072_v57  ;;  %v1469_v60 = vmax.f32 %v1468_v51, %v1121_v58 }
 0x1e0   : > { %v1173_v61 = vpop.f32.mrf.mxu0  ;;  %v1222_v62 = vpop.f32.mrf.mxu1 }
 0x1e1   : > { %v1491_v63 = vmax.f32 %v1490_v55, %v1173_v61  ;;  %v1512_v0 = vmax.f32 %v1511_v56, %v1222_v62 }
 0x1e2   : > { %1270 = vmatmul.bf16.gmra.mxu2 %v2742_v9  ;;  %1319 = vmatmul.bf16.gmra.mxu3 %v2742_v9 }
 0x1e3   : > { %1368 = vmatmul.bf16.gmra.mxu0 %v2742_v9  ;;  %1417 = vmatmul.bf16.gmra.mxu1 %v2742_v9 }
 0x1e5   : > { %v1075_v53 = vpop.f32.mrf.mxu2  ;;  %v1124_v1 = vpop.f32.mrf.mxu3 }
 0x1e6   : > { %v1449_v2 = vmax.f32 %v1448_v59, %v1075_v53  ;;  %v1470_v4 = vmax.f32 %v1469_v60, %v1124_v1 }
 0x1e8   : > { %v1175_v5 = vpop.f32.mrf.mxu0  ;;  %v1224_v7 = vpop.f32.mrf.mxu1 }
 0x1e9   : > { %v1492_v8 = vmax.f32 %v1491_v63, %v1175_v5  ;;  %v1513_v10 = vmax.f32 %v1512_v0, %v1224_v7 }
 0x1ed   : > { %v1077_v11 = vpop.f32.mrf.mxu2  ;;  %v1126_v12 = vpop.f32.mrf.mxu3 }
 0x1ee   : > { %v1450_v13 = vmax.f32 %v1449_v2, %v1077_v11  ;;  %v1471_v16 = vmax.f32 %v1470_v4, %v1126_v12 }
 0x1f0   : > { %v1178_v17 = vpop.f32.mrf.mxu0  ;;  %v1227_v3 = vpop.f32.mrf.mxu1 }
 0x1f1   : > { %v1493_v18 = vmax.f32 %v1492_v8, %v1178_v17  ;;  %v1514_v19 = vmax.f32 %v1513_v10, %v1227_v3 }
 0x1f2   : > { %1275 = vmatmul.bf16.gmra.mxu2 %v2774_v23  ;;  %1324 = vmatmul.bf16.gmra.mxu3 %v2774_v23 }
 0x1f3   : > { %1373 = vmatmul.bf16.gmra.mxu0 %v2774_v23  ;;  %1422 = vmatmul.bf16.gmra.mxu1 %v2774_v23 }
 0x1f5   : > { %v1080_v9 = vpop.f32.mrf.mxu2  ;;  %v1129_v20 = vpop.f32.mrf.mxu3 }
 0x1f6   : > { %v1451_v21 = vmax.f32 %v1450_v13, %v1080_v9  ;;  %v1472_v22 = vmax.f32 %v1471_v16, %v1129_v20 }
 0x1f8   : > { %v1180_v24 = vpop.f32.mrf.mxu0  ;;  %v1229_v25 = vpop.f32.mrf.mxu1 }
 0x1f9   : > { %v1494_v26 = vmax.f32 %v1493_v18, %v1180_v24  ;;  %v1515_v27 = vmax.f32 %v1514_v19, %v1229_v25 }
 0x1fd   : > { %v1082_v28 = vpop.f32.mrf.mxu2  ;;  %v1131_v29 = vpop.f32.mrf.mxu3 }
 0x1fe   : > { %v1452_v30 = vmax.f32 %v1451_v21, %v1082_v28  ;;  %v1473_v31 = vmax.f32 %v1472_v22, %v1131_v29 }
 0x200   : > { %v1183_v15 = vpop.f32.mrf.mxu0  ;;  %v1232_v32 = vpop.f32.mrf.mxu1 }
 0x201   : > { %v1495_v33 = vmax.f32 %v1494_v26, %v1183_v15  ;;  %v1516_v35 = vmax.f32 %v1515_v27, %v1232_v32 }
 0x202   : > { %1280 = vmatmul.bf16.gmra.mxu2 %v2806_v49  ;;  %1329 = vmatmul.bf16.gmra.mxu3 %v2806_v49 }
 0x203   : > { %1378 = vmatmul.bf16.gmra.mxu0 %v2806_v49  ;;  %1427 = vmatmul.bf16.gmra.mxu1 %v2806_v49 }
 0x205   : > { %v1085_v23 = vpop.f32.mrf.mxu2  ;;  %v1134_v36 = vpop.f32.mrf.mxu3 }
 0x206   : > { %v1453_v37 = vmax.f32 %v1452_v30, %v1085_v23  ;;  %v1474_v38 = vmax.f32 %v1473_v31, %v1134_v36 }
 0x208   : > { %v1185_v39 = vpop.f32.mrf.mxu0  ;;  %v1234_v40 = vpop.f32.mrf.mxu1 }
 0x209   : > { %v1496_v41 = vmax.f32 %v1495_v33, %v1185_v39  ;;  %v1517_v42 = vmax.f32 %v1516_v35, %v1234_v40 }
 0x20d   : > { %v1087_v43 = vpop.f32.mrf.mxu2  ;;  %v1136_v44 = vpop.f32.mrf.mxu3 }
 0x20e   : > { %v1454_v45 = vmax.f32 %v1453_v37, %v1087_v43  ;;  %v1475_v46 = vmax.f32 %v1474_v38, %v1136_v44 }
 0x210   : > { %v1188_v47 = vpop.f32.mrf.mxu0  ;;  %v1237_v34 = vpop.f32.mrf.mxu1 }
 0x211   : > { %v1497_v48 = vmax.f32 %v1496_v41, %v1188_v47  ;;  %v1518_v50 = vmax.f32 %v1517_v42, %v1237_v34 }
 0x212   : > { %1285 = vmatmul.bf16.gmra.mxu2 %v2838_v6  ;;  %1334 = vmatmul.bf16.gmra.mxu3 %v2838_v6 }
 0x213   : > { %1383 = vmatmul.bf16.gmra.mxu0 %v2838_v6  ;;  %1432 = vmatmul.bf16.gmra.mxu1 %v2838_v6 }
 0x215   : > { %v1090_v49 = vpop.f32.mrf.mxu2  ;;  %v1139_v51 = vpop.f32.mrf.mxu3 }
 0x216   : > { %v1455_v52 = vmax.f32 %v1454_v45, %v1090_v49  ;;  %v1476_v54 = vmax.f32 %v1475_v46, %v1139_v51 }
 0x218   : > { %v1190_v55 = vpop.f32.mrf.mxu0  ;;  %v1239_v56 = vpop.f32.mrf.mxu1 }
 0x219   : > { %v1498_v57 = vmax.f32 %v1497_v48, %v1190_v55  ;;  %v1519_v58 = vmax.f32 %v1518_v50, %v1239_v56 }
 0x21d   : > { %v1092_v59 = vpop.f32.mrf.mxu2  ;;  %v1141_v60 = vpop.f32.mrf.mxu3 }
 0x21e   : > { %v1456_v61 = vmax.f32 %v1455_v52, %v1092_v59  ;;  %v1477_v62 = vmax.f32 %v1476_v54, %v1141_v60 }
 0x220   : > { %v1193_v63 = vpop.f32.mrf.mxu0  ;;  %v1242_v0 = vpop.f32.mrf.mxu1 }
 0x221   : > { %v1499_v53 = vmax.f32 %v1498_v57, %v1193_v63  ;;  %v1520_v1 = vmax.f32 %v1519_v58, %v1242_v0 }
 0x222   : > { %1290 = vmatmul.bf16.gmra.mxu2 %v2846_v14  ;;  %1339 = vmatmul.bf16.gmra.mxu3 %v2846_v14 }
 0x223   : > { %1388 = vmatmul.bf16.gmra.mxu0 %v2846_v14  ;;  %1437 = vmatmul.bf16.gmra.mxu1 %v2846_v14 }
 0x225   : > { %v1095_v6 = vpop.f32.mrf.mxu2  ;;  %v1144_v2 = vpop.f32.mrf.mxu3 }
 0x226   : > { %v1457_v4 = vmax.f32 %v1456_v61, %v1095_v6  ;;  %v1478_v5 = vmax.f32 %v1477_v62, %v1144_v2 }
 0x228   : > { %v1195_v7 = vpop.f32.mrf.mxu0  ;;  %v1244_v8 = vpop.f32.mrf.mxu1 }
 0x229   : > { %v1500_v10 = vmax.f32 %v1499_v53, %v1195_v7  ;;  %v1521_v11 = vmax.f32 %v1520_v1, %v1244_v8 }
 0x22b   : > { %v1501_v12 = vrot.slane %v1500_v10, 4  ;;  %v1522_v13 = vrot.slane %v1521_v11, 4 }
 0x22d   : > { %v1502_v16 = vmax.f32 %v1500_v10, %v1501_v12  ;;  %v1523_v17 = vmax.f32 %v1521_v11, %v1522_v13  ;;  %v1097_v3 = vpop.f32.mrf.mxu2  ;;  %v1146_v18 = vpop.f32.mrf.mxu3 }
 0x22e   : > { %v1458_v19 = vmax.f32 %v1457_v4, %v1097_v3  ;;  %v1479_v9 = vmax.f32 %v1478_v5, %v1146_v18 }
 0x22f   : > { %v1503_v20 = vrot.slane %v1502_v16, 2  ;;  %v1524_v21 = vrot.slane %v1523_v17, 2 }
 0x230   : > { %v1459_v22 = vrot.slane %v1458_v19, 4  ;;  %v1480_v14 = vrot.slane %v1479_v9, 4  ;;  %v1354_v24 = vpop.f32.mrf.mxu0  ;;  %v1403_v25 = vpop.f32.mrf.mxu1 }
 0x231   : > { %v1504_v26 = vmax.f32 %v1502_v16, %v1503_v20  ;;  %v1525_v27 = vmax.f32 %v1523_v17, %v1524_v21 }
 0x232   : > { %v1460_v28 = vmax.f32 %v1458_v19, %v1459_v22  ;;  %v1481_v29 = vmax.f32 %v1479_v9, %v1480_v14 }
 0x233   : > { %v1505_v30 = vrot.slane %v1504_v26, 1  ;;  %v1526_v31 = vrot.slane %v1525_v27, 1 }
 0x234   : > { %v1461_v15 = vrot.slane %v1460_v28, 2  ;;  %v1482_v32 = vrot.slane %v1481_v29, 2 }
 0x235   : > { %v1506_v33 = vmax.f32 %v1504_v26, %v1505_v30  ;;  %v1527_v35 = vmax.f32 %v1525_v27, %v1526_v31  ;;  %v1256_v23 = vpop.f32.mrf.mxu2  ;;  %v1305_v36 = vpop.f32.mrf.mxu3 }
 0x236   : > { %v1462_v37 = vmax.f32 %v1460_v28, %v1461_v15  ;;  %v1483_v38 = vmax.f32 %v1481_v29, %v1482_v32 }
 0x237   : > { %v1621_v39 = vrot.slane %v1506_v33, 6  ;;  %v1622_v40 = vrot.slane %v1527_v35, 5 }
 0x238   : > { %v1463_v41 = vrot.slane %v1462_v37, 1  ;;  %v1484_v42 = vrot.slane %v1483_v38, 1  ;;  %v1356_v43 = vpop.f32.mrf.mxu0  ;;  %v1405_v44 = vpop.f32.mrf.mxu1 }
 0x239   : > { %v1630_v45 = vsel %vm1629_vm3, %v1621_v39, %v1622_v40  ;;  %v1570_v46 = vmax.f32 %v1354_v24, %v1356_v43  ;;  %v1591_v47 = vmax.f32 %v1403_v25, %v1405_v44 }
 0x23a   : > { %v1485_v34 = vmax.f32 %v1483_v38, %v1484_v42  ;;  %v1464_v48 = vmax.f32 %v1462_v37, %v1463_v41 }
 0x23c   : > { %v1620_v50 = vrot.slane %v1485_v34, 7 }
 0x23d   : > { %v1258_v49 = vpop.f32.mrf.mxu2  ;;  %v1307_v51 = vpop.f32.mrf.mxu3 }
 0x23e   : > { %v1628_v52 = vsel %vm1627_vm4, %v1464_v48, %v1620_v50  ;;  %v1528_v54 = vmax.f32 %v1256_v23, %v1258_v49  ;;  %v1549_v55 = vmax.f32 %v1305_v36, %v1307_v51 }
 0x23f   : > { %v2884_v56 = vsel %vm1631_vm5, %v1628_v52, %v1630_v45 }
 0x240   : > { %v1359_v57 = vpop.f32.mrf.mxu0  ;;  %v1408_v58 = vpop.f32.mrf.mxu1 }
 0x241   : > { %v1571_v59 = vmax.f32 %v1570_v46, %v1359_v57  ;;  %v1592_v60 = vmax.f32 %v1591_v47, %v1408_v58 }
 0x245   : > { %v1261_v61 = vpop.f32.mrf.mxu2  ;;  %v1310_v62 = vpop.f32.mrf.mxu3 }
 0x246   : > { %v1529_v63 = vmax.f32 %v1528_v54, %v1261_v61  ;;  %v1550_v0 = vmax.f32 %v1549_v55, %v1310_v62 }
 0x248   : > { %v1361_v53 = vpop.f32.mrf.mxu0  ;;  %v1410_v1 = vpop.f32.mrf.mxu1 }
 0x249   : > { %v1572_v6 = vmax.f32 %v1571_v59, %v1361_v53  ;;  %v1593_v2 = vmax.f32 %v1592_v60, %v1410_v1 }
 0x24d   : > { %v1263_v4 = vpop.f32.mrf.mxu2  ;;  %v1312_v5 = vpop.f32.mrf.mxu3 }
 0x24e   : > { %v1530_v7 = vmax.f32 %v1529_v63, %v1263_v4  ;;  %v1551_v8 = vmax.f32 %v1550_v0, %v1312_v5 }
 0x250   : > { %v1364_v10 = vpop.f32.mrf.mxu0  ;;  %v1413_v11 = vpop.f32.mrf.mxu1 }
 0x251   : > { %v1573_v12 = vmax.f32 %v1572_v6, %v1364_v10  ;;  %v1594_v13 = vmax.f32 %v1593_v2, %v1413_v11 }
 0x255   : > { %v1266_v16 = vpop.f32.mrf.mxu2  ;;  %v1315_v17 = vpop.f32.mrf.mxu3 }
 0x256   : > { %v1531_v3 = vmax.f32 %v1530_v7, %v1266_v16  ;;  %v1552_v18 = vmax.f32 %v1551_v8, %v1315_v17 }
 0x258   : > { %v1366_v19 = vpop.f32.mrf.mxu0  ;;  %v1415_v9 = vpop.f32.mrf.mxu1 }
 0x259   : > { %v1574_v47 = vmax.f32 %v1573_v12, %v1366_v19  ;;  %v1595_v34 = vmax.f32 %v1594_v13, %v1415_v9 }
 0x25d   : > { %v1268_v20 = vpop.f32.mrf.mxu2  ;;  %v1317_v21 = vpop.f32.mrf.mxu3 }
 0x25e   : > { %v1532_v58 = vmax.f32 %v1531_v3, %v1268_v20  ;;  %v1553_v59 = vmax.f32 %v1552_v18, %v1317_v21 }
 0x260   : > { %v1369_v22 = vpop.f32.mrf.mxu0  ;;  %v1418_v14 = vpop.f32.mrf.mxu1 }
 0x261   : > { %v1575_v49 = vmax.f32 %v1574_v47, %v1369_v22  ;;  %v1596_v51 = vmax.f32 %v1595_v34, %v1418_v14 }
 0x265   : > { %v1271_v24 = vpop.f32.mrf.mxu2  ;;  %v1320_v25 = vpop.f32.mrf.mxu3 }
 0x266   : > { %v1533_v62 = vmax.f32 %v1532_v58, %v1271_v24  ;;  %v1554_v63 = vmax.f32 %v1553_v59, %v1320_v25 }
 0x268   : > { %v1371_v26 = vpop.f32.mrf.mxu0  ;;  %v1420_v27 = vpop.f32.mrf.mxu1 }
 0x269   : > { %v1576_v55 = vmax.f32 %v1575_v49, %v1371_v26  ;;  %v1597_v57 = vmax.f32 %v1596_v51, %v1420_v27 }
 0x26d   : > { %v1273_v28 = vpop.f32.mrf.mxu2  ;;  %v1322_v29 = vpop.f32.mrf.mxu3 }
 0x26e   : > { %v1534_v2 = vmax.f32 %v1533_v62, %v1273_v28  ;;  %v1555_v4 = vmax.f32 %v1554_v63, %v1322_v29 }
 0x270   : > { %v1374_v30 = vpop.f32.mrf.mxu0  ;;  %v1423_v31 = vpop.f32.mrf.mxu1 }
 0x271   : > { %v1577_v60 = vmax.f32 %v1576_v55, %v1374_v30  ;;  %v1598_v61 = vmax.f32 %v1597_v57, %v1423_v31 }
 0x275   : > { %v1276_v15 = vpop.f32.mrf.mxu2  ;;  %v1325_v32 = vpop.f32.mrf.mxu3 }
 0x276   : > { %v1535_v8 = vmax.f32 %v1534_v2, %v1276_v15  ;;  %v1556_v10 = vmax.f32 %v1555_v4, %v1325_v32 }
 0x278   : > { %v1376_v33 = vpop.f32.mrf.mxu0  ;;  %v1425_v35 = vpop.f32.mrf.mxu1 }
 0x279   : > { %v1578_v0 = vmax.f32 %v1577_v60, %v1376_v33  ;;  %v1599_v53 = vmax.f32 %v1598_v61, %v1425_v35 }
 0x27d   : > { %v1278_v23 = vpop.f32.mrf.mxu2  ;;  %v1327_v36 = vpop.f32.mrf.mxu3 }
 0x27e   : > { %v1536_v17 = vmax.f32 %v1535_v8, %v1278_v23  ;;  %v1557_v3 = vmax.f32 %v1556_v10, %v1327_v36  ;;  %v1443_v8 = vld [vmem:[#allocation2] sm:$0xff] }
 0x280   : > { %v1379_v37 = vpop.f32.mrf.mxu0  ;;  %v1428_v38 = vpop.f32.mrf.mxu1 }
 0x281   : > { %v1579_v5 = vmax.f32 %v1578_v0, %v1379_v37  ;;  %v1600_v7 = vmax.f32 %v1599_v53, %v1428_v38 }
 0x285   : > { %v1281_v39 = vpop.f32.mrf.mxu2  ;;  %v1330_v40 = vpop.f32.mrf.mxu3 }
 0x286   : > { %v1537_v9 = vmax.f32 %v1536_v17, %v1281_v39  ;;  %v1558_v20 = vmax.f32 %v1557_v3, %v1330_v40 }
 0x288   : > { %v1381_v41 = vpop.f32.mrf.mxu0  ;;  %v1430_v42 = vpop.f32.mrf.mxu1 }
 0x289   : > { %v1580_v13 = vmax.f32 %v1579_v5, %v1381_v41  ;;  %v1601_v16 = vmax.f32 %v1600_v7, %v1430_v42 }
 0x28d   : > { %v1283_v43 = vpop.f32.mrf.mxu2  ;;  %v1332_v44 = vpop.f32.mrf.mxu3 }
 0x28e   : > { %v1538_v25 = vmax.f32 %v1537_v9, %v1283_v43  ;;  %v1559_v26 = vmax.f32 %v1558_v20, %v1332_v44 }
 0x290   : > { %v1384_v45 = vpop.f32.mrf.mxu0  ;;  %v1433_v46 = vpop.f32.mrf.mxu1 }
 0x291   : > { %v1581_v18 = vmax.f32 %v1580_v13, %v1384_v45  ;;  %v1602_v19 = vmax.f32 %v1601_v16, %v1433_v46 }
 0x295   : > { %v1286_v48 = vpop.f32.mrf.mxu2  ;;  %v1335_v50 = vpop.f32.mrf.mxu3 }
 0x296   : > { %v1539_v29 = vmax.f32 %v1538_v25, %v1286_v48  ;;  %v1560_v30 = vmax.f32 %v1559_v26, %v1335_v50 }
 0x298   : > { %v1386_v52 = vpop.f32.mrf.mxu0  ;;  %v1435_v54 = vpop.f32.mrf.mxu1 }
 0x299   : > { %v1582_v21 = vmax.f32 %v1581_v18, %v1386_v52  ;;  %v1603_v22 = vmax.f32 %v1602_v19, %v1435_v54 }
 0x29d   : > { %v1288_v1 = vpop.f32.mrf.mxu2  ;;  %v1337_v6 = vpop.f32.mrf.mxu3 }
 0x29e   : > { %v1540_v35 = vmax.f32 %v1539_v29, %v1288_v1  ;;  %v1561_v23 = vmax.f32 %v1560_v30, %v1337_v6 }
 0x2a0   : > { %v1389_v11 = vpop.f32.mrf.mxu0  ;;  %v1438_v12 = vpop.f32.mrf.mxu1 }
 0x2a1   : > { %v1583_v27 = vmax.f32 %v1582_v21, %v1389_v11  ;;  %v1604_v28 = vmax.f32 %v1603_v22, %v1438_v12 }
 0x2a5   : > { %v1291_v14 = vpop.f32.mrf.mxu2  ;;  %v1340_v24 = vpop.f32.mrf.mxu3 }
 0x2a6   : > { %v1541_v38 = vmax.f32 %v1540_v35, %v1291_v14  ;;  %v1562_v39 = vmax.f32 %v1561_v23, %v1340_v24 }
 0x2a8   : > { %v1391_v31 = vpop.f32.mrf.mxu0  ;;  %v1440_v15 = vpop.f32.mrf.mxu1 }
 0x2a9   : > { %v1584_v32 = vmax.f32 %v1583_v27, %v1391_v31  ;;  %v1605_v33 = vmax.f32 %v1604_v28, %v1440_v15 }
 0x2ab   : > { %v1585_v36 = vrot.slane %v1584_v32, 4  ;;  %v1606_v37 = vrot.slane %v1605_v33, 4 }
 0x2ad   : > { %v1586_v40 = vmax.f32 %v1584_v32, %v1585_v36  ;;  %v1607_v41 = vmax.f32 %v1605_v33, %v1606_v37  ;;  %v1293_v42 = vpop.f32.mrf.mxu2  ;;  %v1342_v45 = vpop.f32.mrf.mxu3 }
 0x2ae   : > { %v1542_v43 = vmax.f32 %v1541_v38, %v1293_v42  ;;  %v1563_v44 = vmax.f32 %v1562_v39, %v1342_v45 }
 0x2af   : > { %v1587_v46 = vrot.slane %v1586_v40, 2  ;;  %v1608_v47 = vrot.slane %v1607_v41, 2 }
 0x2b0   : > { %v1543_v34 = vrot.slane %v1542_v43, 4  ;;  %v1564_v48 = vrot.slane %v1563_v44, 4 }
 0x2b1   : > { %v1588_v50 = vmax.f32 %v1586_v40, %v1587_v46  ;;  %v1609_v49 = vmax.f32 %v1607_v41, %v1608_v47 }
 0x2b2   : > { %v1544_v51 = vmax.f32 %v1542_v43, %v1543_v34  ;;  %v1565_v52 = vmax.f32 %v1563_v44, %v1564_v48 }
 0x2b3   : > { %v1589_v54 = vrot.slane %v1588_v50, 1  ;;  %v1610_v55 = vrot.slane %v1609_v49, 1 }
 0x2b4   : > { %v1545_v57 = vrot.slane %v1544_v51, 2  ;;  %v1566_v58 = vrot.slane %v1565_v52, 2 }
 0x2b5   : > { %v1590_v59 = vmax.f32 %v1588_v50, %v1589_v54  ;;  %v1611_v60 = vmax.f32 %v1609_v49, %v1610_v55 }
 0x2b6   : > { %v1546_v61 = vmax.f32 %v1544_v51, %v1545_v57  ;;  %v1567_v62 = vmax.f32 %v1565_v52, %v1566_v58 }
 0x2b7   : > { %v1625_v63 = vrot.slane %v1590_v59, 2  ;;  %v1626_v0 = vrot.slane %v1611_v60, 1 }
 0x2b8   : > { %v1547_v53 = vrot.slane %v1546_v61, 1  ;;  %v1568_v1 = vrot.slane %v1567_v62, 1 }
 0x2b9   : > { %v1636_v6 = vsel %vm1635_vm6, %v1625_v63, %v1626_v0 }
 0x2ba   : > { %v1548_v2 = vmax.f32 %v1546_v61, %v1547_v53  ;;  %v1569_v4 = vmax.f32 %v1567_v62, %v1568_v1 }
 0x2bc   : > { %v1623_v5 = vrot.slane %v1548_v2, 4  ;;  %v1624_v7 = vrot.slane %v1569_v4, 3 }
 0x2be   : > { %v1634_v10 = vsel %vm1633_vm7, %v1623_v5, %v1624_v7 }
 0x2bf   : > { %v1638_v11 = vsel %vm1637_vm8, %v1634_v10, %v1636_v6  ;;  %1647 = sbr.rel (%p2076_p8) target bundleno = 720 (0x2d0), region = 56 }
 0x2c0   : > { %v1640_v12 = vsel %vm1639_vm9, %v2884_v56, %v1638_v11 }
 0x2c1   : > { %v1642_v13 = vmax.f32 %v1443_v8, %v1640_v12 }
 0x2c3   : > { %1643 = vst [vmem:[#allocation2] sm:$0xff] %v1642_v13 }
 0x2c4   : > { %v1649_v17 = vld [vmem:[%s2913_s6] sm:$0xff] }
 0x2ca   : > { %v1648_v16 = vld [vmem:[#allocation2] sm:$0xff] }
 0x2cb   : > { %v1650_v3 = vadd.f32 %v1649_v17, %v1648_v16 }
 0x2cd   : > { %v1651_v18 = vmax.f32 %v1650_v3, 0.0 }
 0x2cf   : > { %1652 = vst [vmem:[%s2312_s14] sm:$0xff] %v1651_v18 }
 0x2d0 PF: > { %s17_s28 = sadd.s32 1, %s2233_s28   ;;  %s2915_s24 = smov %s2225_s26 }
 0x2d1   : > { %p14_p9 = scmp.ge.s32.totalorder %s17_s28, 6   ;;  %s2916_s25 = smov %s2229_s27 }
 0x2d2   : > { %s2917_s26 = smov %s2920_s29  ;;  %s2918_s27 = smov %s2924_s30 }
 0x2d3   :  { %16 = sbr.rel (!%p14_p9) target bundleno = 3 (0x3), region = 92 }

</bundles_post_ra>
